<compile_context>
chip_gen: v7x
topology: tpu7x:2x2x1
jax: 0.10.0
libtpu: 0.0.40
codegen_flags: <defaults>
</compile_context>

<pallas_src>
import jax
import jax.numpy as jnp
from jax.experimental import pallas as pl
from jax.experimental.pallas import tpu as pltpu


def _round_up(x, m):
    return ((x + m - 1) // m) * m


# ----------------------------------------------------------------------------
# Fused Pallas kernel: embedding -> stacked LSTM cells -> attention -> out proj
# ----------------------------------------------------------------------------
def _make_decoder_step_kernel(n_layers):
    def kernel(ids_ref, emb_ref, enc_ref, hid_ref, cell_ref, *rest):
        layer_refs = rest[:3 * n_layers]
        w_dec_ref, w_ctx_ref, b_out_ref = rest[3 * n_layers:3 * n_layers + 3]
        pred_ref, h_out_ref, c_out_ref = rest[3 * n_layers + 3:]

        B = ids_ref.shape[0]
        Vp = emb_ref.shape[0]
        Hp = hid_ref.shape[-1]

        # ---- embedding lookup fused as a one-hot matmul (MXU; no separate XLA gather) ----
        ids = ids_ref[...]                                              # (B, 1) int32
        vocab_iota = jax.lax.broadcasted_iota(jnp.int32, (B, Vp), 1)    # (B, Vp)
        onehot = (vocab_iota == ids).astype(jnp.float32)                # (B, Vp)
        x = jnp.dot(onehot, emb_ref[...], preferred_element_type=jnp.float32)   # (B, E)
        # nn.Dropout in eval mode -> identity.
        # TODO(synk): train-mode dropout RNG (pltpu.prng_*) not implemented.

        # ---- stacked LSTM cells, single time step (PyTorch gate order i, f, g, o) ----
        for l in range(n_layers):
            w_ih = layer_refs[3 * l][...]          # (in_dim, 4*Hp)
            w_hh = layer_refs[3 * l + 1][...]      # (Hp, 4*Hp)
            b = layer_refs[3 * l + 2][...]         # (1, 4*Hp)  (b_ih + b_hh)
            h_prev = hid_ref[l]                    # (B, Hp)
            c_prev = cell_ref[l]                   # (B, Hp)
            gates = (jnp.dot(x, w_ih, preferred_element_type=jnp.float32)
                     + jnp.dot(h_prev, w_hh, preferred_element_type=jnp.float32)
                     + b)
            i = jax.nn.sigmoid(gates[:, 0 * Hp:1 * Hp])
            f = jax.nn.sigmoid(gates[:, 1 * Hp:2 * Hp])
            g = jnp.tanh(gates[:, 2 * Hp:3 * Hp])
            o = jax.nn.sigmoid(gates[:, 3 * Hp:4 * Hp])
            c_new = f * c_prev + i * g
            h_new = o * jnp.tanh(c_new)
            h_out_ref[l] = h_new
            c_out_ref[l] = c_new
            x = h_new

        dec = x                                    # (B, Hp) top-layer output
        enc = enc_ref[...]                         # (B, S, Hp) encoder outputs, batch-major

        # ---- Luong dot-product attention: batched matmuls on the MXU ----
        q = dec[:, None, :]                                             # (B, 1, Hp)
        s = jnp.einsum('bqd,bkd->bqk', q, enc,
                       preferred_element_type=jnp.float32)              # (B, 1, S)
        s = s - jnp.max(s, axis=-1, keepdims=True)
        p = jnp.exp(s)
        p = p / jnp.sum(p, axis=-1, keepdims=True)
        ctx = jnp.einsum('bqk,bkd->bqd', p, enc,
                         preferred_element_type=jnp.float32)[:, 0, :]   # (B, Hp)

        # ---- output: concat([dec, ctx]) @ W_out + b_out, as two matmuls (same math) ----
        pred_ref[...] = (jnp.dot(dec, w_dec_ref[...], preferred_element_type=jnp.float32)
                         + jnp.dot(ctx, w_ctx_ref[...], preferred_element_type=jnp.float32)
                         + b_out_ref[...])

    return kernel


def decoder_step_pallas(ids_p, emb_p, enc_p, hid_p, cell_p, layer_weights,
                        w_dec, w_ctx, b_out):
    """One fused pallas_call per decode step. All operands are small full-array VMEM blocks."""
    n_layers, b_pad, h_pad = hid_p.shape
    v_pad = w_dec.shape[-1]
    flat_weights = [w for triple in layer_weights for w in triple]
    vmem = pl.BlockSpec(memory_space=pltpu.MemorySpace.VMEM)
    n_in = 5 + len(flat_weights) + 3

    # TODO(synk): production-scale follow-ups: tile enc over S with an online softmax for
    # v7x's smaller VMEM, cast matmul operands to bf16 on v6e/v7x (keep f32 accumulation
    # and f32 elementwise on v5e), add a "parallel" batch grid axis for megacore, and keep
    # weights VMEM-resident across decode steps by moving the time loop into the grid.
    return pl.pallas_call(
        _make_decoder_step_kernel(n_layers),
        in_specs=[vmem] * n_in,
        out_specs=(vmem, vmem, vmem),
        out_shape=(jax.ShapeDtypeStruct((b_pad, v_pad), jnp.float32),
                   jax.ShapeDtypeStruct((n_layers, b_pad, h_pad), jnp.float32),
                   jax.ShapeDtypeStruct((n_layers, b_pad, h_pad), jnp.float32)),
        compiler_params=pltpu.CompilerParams(vmem_limit_bytes=32 * 1024 * 1024),
    )(ids_p, emb_p, enc_p, hid_p, cell_p, *flat_weights, w_dec, w_ctx, b_out)


# ----------------------------------------------------------------------------
# Once-per-sequence preparation (hoisted out of the per-token hot path)
# ----------------------------------------------------------------------------
def prepare_kernel_params(params, hid_dim, h_pad, v_pad):
    """Pad / pre-arrange weights once. Each LSTM gate block is padded independently so
    every gate slice inside the kernel is 128-lane aligned; all padding is zeros."""
    vocab, _ = params["embedding"].shape
    kp = {"embedding": jnp.pad(params["embedding"], ((0, v_pad - vocab), (0, 0)))}

    layers = []
    for l in range(len(params["w_ih"])):
        w_ih = params["w_ih"][l]                       # (in_dim, 4*H)
        w_hh = params["w_hh"][l]                       # (H, 4*H)
        b = params["b"][l]                             # (1, 4*H)
        in_dim = w_ih.shape[0]
        w_ih_p = jnp.pad(w_ih.reshape(in_dim, 4, hid_dim),
                         ((0, 0), (0, 0), (0, h_pad - hid_dim))).reshape(in_dim, 4 * h_pad)
        if l > 0:  # layers > 0 take the (padded) hidden state as input
            w_ih_p = jnp.pad(w_ih_p, ((0, h_pad - in_dim), (0, 0)))
        w_hh_p = jnp.pad(w_hh.reshape(hid_dim, 4, hid_dim),
                         ((0, h_pad - hid_dim), (0, 0), (0, h_pad - hid_dim))
                         ).reshape(h_pad, 4 * h_pad)
        b_p = jnp.pad(b.reshape(1, 4, hid_dim),
                      ((0, 0), (0, 0), (0, h_pad - hid_dim))).reshape(1, 4 * h_pad)
        layers.append((w_ih_p, w_hh_p, b_p))
    kp["layers"] = layers

    w_out = params["w_out"]                            # (2*H, V): [dec-rows | ctx-rows]
    kp["w_dec"] = jnp.pad(w_out[:hid_dim, :], ((0, h_pad - hid_dim), (0, v_pad - vocab)))
    kp["w_ctx"] = jnp.pad(w_out[hid_dim:, :], ((0, h_pad - hid_dim), (0, v_pad - vocab)))
    kp["b_out"] = jnp.pad(params["b_out"], ((0, 0), (0, v_pad - vocab)))
    return kp


def prepare_encoder(encoder_output, b_pad, h_pad):
    """(S, B, H) seq-first -> (B, S, H) batch-major + zero padding, ONCE per sequence."""
    _, batch, hid = encoder_output.shape
    enc_bm = jnp.transpose(encoder_output, (1, 0, 2))
    return jnp.pad(enc_bm, ((0, b_pad - batch), (0, 0), (0, h_pad - hid)))


# ----------------------------------------------------------------------------
# DecoderAttn forward (one decode step)
# ----------------------------------------------------------------------------
def decoder_attn_forward(kparams, input_ids, hidden, cell, enc_padded,
                         hid_dim, output_dim):
    """Mirrors DecoderAttn.forward for one decode step.

    input_ids    : (B,) int32 token ids
    hidden, cell : (n_layers, B, H)
    enc_padded   : (B_pad, S, H_pad) pre-transposed/padded encoder outputs
    returns (prediction (B, V), hidden (n_layers, B, H), cell (n_layers, B, H))
    """
    n_layers, batch, _ = hidden.shape
    b_pad, _, h_pad = enc_padded.shape

    ids_p = jnp.zeros((b_pad, 1), jnp.int32).at[:batch, 0].set(input_ids)
    hid_p = jnp.zeros((n_layers, b_pad, h_pad), jnp.float32).at[:, :batch, :hid_dim].set(hidden)
    cell_p = jnp.zeros((n_layers, b_pad, h_pad), jnp.float32).at[:, :batch, :hid_dim].set(cell)

    pred_p, h_p, c_p = decoder_step_pallas(
        ids_p, kparams["embedding"], enc_padded, hid_p, cell_p,
        kparams["layers"], kparams["w_dec"], kparams["w_ctx"], kparams["b_out"])

    # drop padded batch rows / hidden lanes / vocab columns before handing state back
    prediction = pred_p[:batch, :output_dim]
    new_hidden = h_p[:, :batch, :hid_dim]
    new_cell = c_p[:, :batch, :hid_dim]
    return prediction, new_hidden, new_cell


# ----------------------------------------------------------------------------
# Pure-JAX reference (for correctness check)
# ----------------------------------------------------------------------------
def reference_forward(params, input_ids, hidden, cell, encoder_output):
    emb = params["embedding"][input_ids]
    x = emb
    new_h, new_c = [], []
    for l in range(len(params["w_ih"])):
        H = hidden.shape[-1]
        gates = x @ params["w_ih"][l] + hidden[l] @ params["w_hh"][l] + params["b"][l]
        i = jax.nn.sigmoid(gates[:, 0 * H:1 * H])
        f = jax.nn.sigmoid(gates[:, 1 * H:2 * H])
        g = jnp.tanh(gates[:, 2 * H:3 * H])
        o = jax.nn.sigmoid(gates[:, 3 * H:4 * H])
        c_l = f * cell[l] + i * g
        h_l = o * jnp.tanh(c_l)
        new_h.append(h_l)
        new_c.append(c_l)
        x = h_l
    output = x
    enc = jnp.transpose(encoder_output, (1, 0, 2))       # (B, S, H)
    scores = jnp.einsum("bh,bsh->bs", output, enc)
    p = jax.nn.softmax(scores, axis=-1)
    ctx = jnp.einsum("bs,bsh->bh", p, enc)
    concat = jnp.concatenate([output, ctx], axis=-1)
    pred = concat @ params["w_out"] + params["b_out"]
    return pred, jnp.stack(new_h), jnp.stack(new_c)


# ----------------------------------------------------------------------------
# Deterministic parameter init + driver
# ----------------------------------------------------------------------------
def init_params(key, output_dim, emb_dim, hid_dim, n_layers):
    keys = jax.random.split(key, 4 + 3 * n_layers)
    k_iter = iter(keys)
    params = {
        "embedding": 0.1 * jax.random.normal(next(k_iter), (output_dim, emb_dim), jnp.float32),
        "w_ih": [], "w_hh": [], "b": [],
    }
    for l in range(n_layers):
        in_dim = emb_dim if l == 0 else hid_dim
        params["w_ih"].append(0.1 * jax.random.normal(next(k_iter), (in_dim, 4 * hid_dim), jnp.float32))
        params["w_hh"].append(0.1 * jax.random.normal(next(k_iter), (hid_dim, 4 * hid_dim), jnp.float32))
        params["b"].append(0.01 * jax.random.normal(next(k_iter), (1, 4 * hid_dim), jnp.float32))
    params["w_out"] = 0.1 * jax.random.normal(next(k_iter), (2 * hid_dim, output_dim), jnp.float32)
    params["b_out"] = 0.01 * jax.random.normal(next(k_iter), (1, output_dim), jnp.float32)
    return params


if __name__ == "__main__":
    OUTPUT_DIM = 32   # vocab size
    EMB_DIM = 16
    HID_DIM = 32
    N_LAYERS = 2
    BATCH = 4
    SRC_LEN = 8

    H_PAD = _round_up(HID_DIM, 128)   # lane-aligned gate slices / lane-dense hidden
    V_PAD = _round_up(OUTPUT_DIM, 128)  # lane-dense (unmasked) prediction store
    B_PAD = _round_up(BATCH, 8)       # full sublane utilization

    root = jax.random.PRNGKey(0)
    k_par, k_ids, k_h, k_c, k_enc = jax.random.split(root, 5)

    params = init_params(k_par, OUTPUT_DIM, EMB_DIM, HID_DIM, N_LAYERS)

    input_ids = jax.random.randint(k_ids, (BATCH,), 0, OUTPUT_DIM, dtype=jnp.int32)
    hidden = 0.1 * jax.random.normal(k_h, (N_LAYERS, BATCH, HID_DIM), jnp.float32)
    cell = 0.1 * jax.random.normal(k_c, (N_LAYERS, BATCH, HID_DIM), jnp.float32)
    encoder_output = 0.1 * jax.random.normal(k_enc, (SRC_LEN, BATCH, HID_DIM), jnp.float32)

    # --- once-per-sequence preparation (hoisted out of the decode loop) ---
    kparams = prepare_kernel_params(params, HID_DIM, H_PAD, V_PAD)
    enc_padded = prepare_encoder(encoder_output, B_PAD, H_PAD)

    pred, new_h, new_c = decoder_attn_forward(kparams, input_ids, hidden, cell,
                                              enc_padded, HID_DIM, OUTPUT_DIM)
    pred = jax.block_until_ready(pred)
    new_h = jax.block_until_ready(new_h)
    new_c = jax.block_until_ready(new_c)

    # correctness check against pure-JAX reference
    pred_ref, h_ref, c_ref = reference_forward(params, input_ids, hidden, cell, encoder_output)
    assert pred.shape == (BATCH, OUTPUT_DIM)
    assert new_h.shape == (N_LAYERS, BATCH, HID_DIM)
    assert new_c.shape == (N_LAYERS, BATCH, HID_DIM)
    assert jnp.allclose(pred, pred_ref, atol=1e-5, rtol=1e-5), float(jnp.max(jnp.abs(pred - pred_ref)))
    assert jnp.allclose(new_h, h_ref, atol=1e-5, rtol=1e-5)
    assert jnp.allclose(new_c, c_ref, atol=1e-5, rtol=1e-5)

    print("KERNEL_OK")
</pallas_src>

<mosaic_0001>
module attributes {stable_mosaic.version = 11 : i64} {
  func.func @kernel(%arg0: memref<8x1xi32, #tpu.memory_space<vmem>>, %arg1: memref<128x16xf32, #tpu.memory_space<vmem>>, %arg2: memref<8x8x128xf32, #tpu.memory_space<vmem>>, %arg3: memref<2x8x128xf32, #tpu.memory_space<vmem>>, %arg4: memref<2x8x128xf32, #tpu.memory_space<vmem>>, %arg5: memref<16x512xf32, #tpu.memory_space<vmem>>, %arg6: memref<128x512xf32, #tpu.memory_space<vmem>>, %arg7: memref<1x512xf32, #tpu.memory_space<vmem>>, %arg8: memref<128x512xf32, #tpu.memory_space<vmem>>, %arg9: memref<128x512xf32, #tpu.memory_space<vmem>>, %arg10: memref<1x512xf32, #tpu.memory_space<vmem>>, %arg11: memref<128x128xf32, #tpu.memory_space<vmem>>, %arg12: memref<128x128xf32, #tpu.memory_space<vmem>>, %arg13: memref<1x128xf32, #tpu.memory_space<vmem>>, %arg14: memref<8x128xf32, #tpu.memory_space<vmem>>, %arg15: memref<2x8x128xf32, #tpu.memory_space<vmem>>, %arg16: memref<2x8x128xf32, #tpu.memory_space<vmem>>) attributes {dimension_semantics = [], scalar_prefetch = 0 : i64, scratch_operands = 0 : i64, tpu.core_type = #tpu.core_type<tc>} {
    %c0 = arith.constant 0 : index
    %c0_0 = arith.constant 0 : index
    %0 = vector.load %arg0[%c0, %c0_0] : memref<8x1xi32, #tpu.memory_space<vmem>>, vector<8x1xi32>
    %1 = tpu.iota {dimensions = array<i32: 1>} : vector<8x128xi32>
    %2 = vector.broadcast %0 : vector<8x1xi32> to vector<8x128xi32>
    %3 = arith.cmpi eq, %1, %2 : vector<8x128xi32>
    %4 = arith.extui %3 : vector<8x128xi1> to vector<8x128xi32>
    %5 = arith.sitofp %4 : vector<8x128xi32> to vector<8x128xf32>
    %c0_1 = arith.constant 0 : index
    %c0_2 = arith.constant 0 : index
    %6 = vector.load %arg1[%c0_1, %c0_2] : memref<128x16xf32, #tpu.memory_space<vmem>>, vector<128x16xf32>
    %cst = arith.constant dense<0.000000e+00> : vector<8x16xf32>
    %7 = tpu.matmul %5, %6, %cst {dimension_numbers = #tpu.dot_dimension_numbers<[1], [0], [0], [1], [0, 0, 1, 1], [], []>} : vector<8x128xf32>, vector<128x16xf32>, vector<8x16xf32> -> vector<8x16xf32>
    %c0_3 = arith.constant 0 : index
    %c0_4 = arith.constant 0 : index
    %8 = vector.load %arg5[%c0_3, %c0_4] : memref<16x512xf32, #tpu.memory_space<vmem>>, vector<16x512xf32>
    %c0_5 = arith.constant 0 : index
    %c0_6 = arith.constant 0 : index
    %9 = vector.load %arg6[%c0_5, %c0_6] : memref<128x512xf32, #tpu.memory_space<vmem>>, vector<128x512xf32>
    %c0_7 = arith.constant 0 : index
    %c0_8 = arith.constant 0 : index
    %10 = vector.load %arg7[%c0_7, %c0_8] : memref<1x512xf32, #tpu.memory_space<vmem>>, vector<1x512xf32>
    %c0_9 = arith.constant 0 : index
    %c0_10 = arith.constant 0 : index
    %c0_11 = arith.constant 0 : index
    %11 = vector.load %arg3[%c0_9, %c0_10, %c0_11] : memref<2x8x128xf32, #tpu.memory_space<vmem>>, vector<1x8x128xf32>
    %12 = vector.shape_cast %11 : vector<1x8x128xf32> to vector<8x128xf32>
    %c0_12 = arith.constant 0 : index
    %c0_13 = arith.constant 0 : index
    %c0_14 = arith.constant 0 : index
    %13 = vector.load %arg4[%c0_12, %c0_13, %c0_14] : memref<2x8x128xf32, #tpu.memory_space<vmem>>, vector<1x8x128xf32>
    %14 = vector.shape_cast %13 : vector<1x8x128xf32> to vector<8x128xf32>
    %cst_15 = arith.constant dense<0.000000e+00> : vector<8x512xf32>
    %15 = tpu.matmul %7, %8, %cst_15 {dimension_numbers = #tpu.dot_dimension_numbers<[1], [0], [0], [1], [0, 0, 1, 1], [], []>} : vector<8x16xf32>, vector<16x512xf32>, vector<8x512xf32> -> vector<8x512xf32>
    %cst_16 = arith.constant dense<0.000000e+00> : vector<8x512xf32>
    %16 = tpu.matmul %12, %9, %cst_16 {dimension_numbers = #tpu.dot_dimension_numbers<[1], [0], [0], [1], [0, 0, 1, 1], [], []>} : vector<8x128xf32>, vector<128x512xf32>, vector<8x512xf32> -> vector<8x512xf32>
    %17 = arith.addf %15, %16 : vector<8x512xf32>
    %18 = vector.broadcast %10 : vector<1x512xf32> to vector<8x512xf32>
    %19 = arith.addf %17, %18 : vector<8x512xf32>
    %20 = vector.extract_strided_slice %19 {offsets = [0, 0], sizes = [8, 128], strides = [1, 1]} : vector<8x512xf32> to vector<8x128xf32>
    %21 = arith.negf %20 : vector<8x128xf32>
    %22 = math.exp %21 : vector<8x128xf32>
    %cst_17 = arith.constant 1.000000e+00 : f32
    %23 = vector.broadcast %cst_17 : f32 to vector<8x128xf32>
    %24 = arith.addf %23, %22 : vector<8x128xf32>
    %25 = arith.divf %23, %24 : vector<8x128xf32>
    %26 = vector.extract_strided_slice %19 {offsets = [0, 128], sizes = [8, 128], strides = [1, 1]} : vector<8x512xf32> to vector<8x128xf32>
    %27 = arith.negf %26 : vector<8x128xf32>
    %28 = math.exp %27 : vector<8x128xf32>
    %cst_18 = arith.constant 1.000000e+00 : f32
    %29 = vector.broadcast %cst_18 : f32 to vector<8x128xf32>
    %30 = arith.addf %29, %28 : vector<8x128xf32>
    %31 = arith.divf %29, %30 : vector<8x128xf32>
    %32 = vector.extract_strided_slice %19 {offsets = [0, 256], sizes = [8, 128], strides = [1, 1]} : vector<8x512xf32> to vector<8x128xf32>
    %33 = math.tanh %32 : vector<8x128xf32>
    %34 = vector.extract_strided_slice %19 {offsets = [0, 384], sizes = [8, 128], strides = [1, 1]} : vector<8x512xf32> to vector<8x128xf32>
    %35 = arith.negf %34 : vector<8x128xf32>
    %36 = math.exp %35 : vector<8x128xf32>
    %cst_19 = arith.constant 1.000000e+00 : f32
    %37 = vector.broadcast %cst_19 : f32 to vector<8x128xf32>
    %38 = arith.addf %37, %36 : vector<8x128xf32>
    %39 = arith.divf %37, %38 : vector<8x128xf32>
    %40 = arith.mulf %31, %14 : vector<8x128xf32>
    %41 = arith.mulf %25, %33 : vector<8x128xf32>
    %42 = arith.addf %40, %41 : vector<8x128xf32>
    %43 = math.tanh %42 : vector<8x128xf32>
    %44 = arith.mulf %39, %43 : vector<8x128xf32>
    %c0_20 = arith.constant 0 : index
    %c0_21 = arith.constant 0 : index
    %c0_22 = arith.constant 0 : index
    %45 = vector.load %arg15[%c0_20, %c0_21, %c0_22] : memref<2x8x128xf32, #tpu.memory_space<vmem>>, vector<1x8x128xf32>
    %46 = vector.shape_cast %45 : vector<1x8x128xf32> to vector<8x128xf32>
    %47 = vector.shape_cast %44 : vector<8x128xf32> to vector<1x8x128xf32>
    tpu.vector_store %arg15[%c0_20, %c0_21, %c0_22], %47 {strides = array<i32>} : memref<2x8x128xf32, #tpu.memory_space<vmem>>, vector<1x8x128xf32>,
    %c0_23 = arith.constant 0 : index
    %c0_24 = arith.constant 0 : index
    %c0_25 = arith.constant 0 : index
    %48 = vector.load %arg16[%c0_23, %c0_24, %c0_25] : memref<2x8x128xf32, #tpu.memory_space<vmem>>, vector<1x8x128xf32>
    %49 = vector.shape_cast %48 : vector<1x8x128xf32> to vector<8x128xf32>
    %50 = vector.shape_cast %42 : vector<8x128xf32> to vector<1x8x128xf32>
    tpu.vector_store %arg16[%c0_23, %c0_24, %c0_25], %50 {strides = array<i32>} : memref<2x8x128xf32, #tpu.memory_space<vmem>>, vector<1x8x128xf32>,
    %c0_26 = arith.constant 0 : index
    %c0_27 = arith.constant 0 : index
    %51 = vector.load %arg8[%c0_26, %c0_27] : memref<128x512xf32, #tpu.memory_space<vmem>>, vector<128x512xf32>
    %c0_28 = arith.constant 0 : index
    %c0_29 = arith.constant 0 : index
    %52 = vector.load %arg9[%c0_28, %c0_29] : memref<128x512xf32, #tpu.memory_space<vmem>>, vector<128x512xf32>
    %c0_30 = arith.constant 0 : index
    %c0_31 = arith.constant 0 : index
    %53 = vector.load %arg10[%c0_30, %c0_31] : memref<1x512xf32, #tpu.memory_space<vmem>>, vector<1x512xf32>
    %c1 = arith.constant 1 : index
    %c0_32 = arith.constant 0 : index
    %c0_33 = arith.constant 0 : index
    %54 = vector.load %arg3[%c1, %c0_32, %c0_33] : memref<2x8x128xf32, #tpu.memory_space<vmem>>, vector<1x8x128xf32>
    %55 = vector.shape_cast %54 : vector<1x8x128xf32> to vector<8x128xf32>
    %c1_34 = arith.constant 1 : index
    %c0_35 = arith.constant 0 : index
    %c0_36 = arith.constant 0 : index
    %56 = vector.load %arg4[%c1_34, %c0_35, %c0_36] : memref<2x8x128xf32, #tpu.memory_space<vmem>>, vector<1x8x128xf32>
    %57 = vector.shape_cast %56 : vector<1x8x128xf32> to vector<8x128xf32>
    %cst_37 = arith.constant dense<0.000000e+00> : vector<8x512xf32>
    %58 = tpu.matmul %44, %51, %cst_37 {dimension_numbers = #tpu.dot_dimension_numbers<[1], [0], [0], [1], [0, 0, 1, 1], [], []>} : vector<8x128xf32>, vector<128x512xf32>, vector<8x512xf32> -> vector<8x512xf32>
    %cst_38 = arith.constant dense<0.000000e+00> : vector<8x512xf32>
    %59 = tpu.matmul %55, %52, %cst_38 {dimension_numbers = #tpu.dot_dimension_numbers<[1], [0], [0], [1], [0, 0, 1, 1], [], []>} : vector<8x128xf32>, vector<128x512xf32>, vector<8x512xf32> -> vector<8x512xf32>
    %60 = arith.addf %58, %59 : vector<8x512xf32>
    %61 = vector.broadcast %53 : vector<1x512xf32> to vector<8x512xf32>
    %62 = arith.addf %60, %61 : vector<8x512xf32>
    %63 = vector.extract_strided_slice %62 {offsets = [0, 0], sizes = [8, 128], strides = [1, 1]} : vector<8x512xf32> to vector<8x128xf32>
    %64 = arith.negf %63 : vector<8x128xf32>
    %65 = math.exp %64 : vector<8x128xf32>
    %cst_39 = arith.constant 1.000000e+00 : f32
    %66 = vector.broadcast %cst_39 : f32 to vector<8x128xf32>
    %67 = arith.addf %66, %65 : vector<8x128xf32>
    %68 = arith.divf %66, %67 : vector<8x128xf32>
    %69 = vector.extract_strided_slice %62 {offsets = [0, 128], sizes = [8, 128], strides = [1, 1]} : vector<8x512xf32> to vector<8x128xf32>
    %70 = arith.negf %69 : vector<8x128xf32>
    %71 = math.exp %70 : vector<8x128xf32>
    %cst_40 = arith.constant 1.000000e+00 : f32
    %72 = vector.broadcast %cst_40 : f32 to vector<8x128xf32>
    %73 = arith.addf %72, %71 : vector<8x128xf32>
    %74 = arith.divf %72, %73 : vector<8x128xf32>
    %75 = vector.extract_strided_slice %62 {offsets = [0, 256], sizes = [8, 128], strides = [1, 1]} : vector<8x512xf32> to vector<8x128xf32>
    %76 = math.tanh %75 : vector<8x128xf32>
    %77 = vector.extract_strided_slice %62 {offsets = [0, 384], sizes = [8, 128], strides = [1, 1]} : vector<8x512xf32> to vector<8x128xf32>
    %78 = arith.negf %77 : vector<8x128xf32>
    %79 = math.exp %78 : vector<8x128xf32>
    %cst_41 = arith.constant 1.000000e+00 : f32
    %80 = vector.broadcast %cst_41 : f32 to vector<8x128xf32>
    %81 = arith.addf %80, %79 : vector<8x128xf32>
    %82 = arith.divf %80, %81 : vector<8x128xf32>
    %83 = arith.mulf %74, %57 : vector<8x128xf32>
    %84 = arith.mulf %68, %76 : vector<8x128xf32>
    %85 = arith.addf %83, %84 : vector<8x128xf32>
    %86 = math.tanh %85 : vector<8x128xf32>
    %87 = arith.mulf %82, %86 : vector<8x128xf32>
    %c1_42 = arith.constant 1 : index
    %c0_43 = arith.constant 0 : index
    %c0_44 = arith.constant 0 : index
    %88 = vector.load %arg15[%c1_42, %c0_43, %c0_44] : memref<2x8x128xf32, #tpu.memory_space<vmem>>, vector<1x8x128xf32>
    %89 = vector.shape_cast %88 : vector<1x8x128xf32> to vector<8x128xf32>
    %90 = vector.shape_cast %87 : vector<8x128xf32> to vector<1x8x128xf32>
    tpu.vector_store %arg15[%c1_42, %c0_43, %c0_44], %90 {strides = array<i32>} : memref<2x8x128xf32, #tpu.memory_space<vmem>>, vector<1x8x128xf32>,
    %c1_45 = arith.constant 1 : index
    %c0_46 = arith.constant 0 : index
    %c0_47 = arith.constant 0 : index
    %91 = vector.load %arg16[%c1_45, %c0_46, %c0_47] : memref<2x8x128xf32, #tpu.memory_space<vmem>>, vector<1x8x128xf32>
    %92 = vector.shape_cast %91 : vector<1x8x128xf32> to vector<8x128xf32>
    %93 = vector.shape_cast %85 : vector<8x128xf32> to vector<1x8x128xf32>
    tpu.vector_store %arg16[%c1_45, %c0_46, %c0_47], %93 {strides = array<i32>} : memref<2x8x128xf32, #tpu.memory_space<vmem>>, vector<1x8x128xf32>,
    %c0_48 = arith.constant 0 : index
    %c0_49 = arith.constant 0 : index
    %c0_50 = arith.constant 0 : index
    %94 = vector.load %arg2[%c0_48, %c0_49, %c0_50] : memref<8x8x128xf32, #tpu.memory_space<vmem>>, vector<8x8x128xf32>
    %95 = vector.shape_cast %87 : vector<8x128xf32> to vector<8x1x128xf32>
    "tpu.trace_start"() <{level = 10 : i32, message = "bqd,bkd->bqk"}> : () -> ()
    %cst_51 = arith.constant dense<0.000000e+00> : vector<8x1x8xf32>
    %96 = tpu.matmul %95, %94, %cst_51 {dimension_numbers = #tpu.dot_dimension_numbers<[2], [2], [1], [1], [0, 0, 0, 1, 1, 1], [0], [0]>} : vector<8x1x128xf32>, vector<8x8x128xf32>, vector<8x1x8xf32> -> vector<8x1x8xf32>
    "tpu.trace_stop"() : () -> ()
    %cst_52 = arith.constant dense<0xFF800000> : vector<8x1xf32>
    %97 = vector.multi_reduction <maximumf>, %96, %cst_52 [2] : vector<8x1x8xf32> to vector<8x1xf32>
    %98 = vector.shape_cast %97 : vector<8x1xf32> to vector<8x1x1xf32>
    %99 = vector.broadcast %98 : vector<8x1x1xf32> to vector<8x1x8xf32>
    %100 = arith.subf %96, %99 : vector<8x1x8xf32>
    %101 = math.exp %100 : vector<8x1x8xf32>
    %cst_53 = arith.constant dense<0.000000e+00> : vector<8x1xf32>
    %102 = vector.multi_reduction <add>, %101, %cst_53 [2] : vector<8x1x8xf32> to vector<8x1xf32>
    %103 = vector.shape_cast %102 : vector<8x1xf32> to vector<8x1x1xf32>
    %104 = vector.broadcast %103 : vector<8x1x1xf32> to vector<8x1x8xf32>
    %105 = arith.divf %101, %104 : vector<8x1x8xf32>
    "tpu.trace_start"() <{level = 10 : i32, message = "bqk,bkd->bqd"}> : () -> ()
    %cst_54 = arith.constant dense<0.000000e+00> : vector<8x1x128xf32>
    %106 = tpu.matmul %105, %94, %cst_54 {dimension_numbers = #tpu.dot_dimension_numbers<[2], [1], [1], [2], [0, 0, 0, 1, 1, 2], [0], [0]>} : vector<8x1x8xf32>, vector<8x8x128xf32>, vector<8x1x128xf32> -> vector<8x1x128xf32>
    "tpu.trace_stop"() : () -> ()
    %107 = vector.shape_cast %106 : vector<8x1x128xf32> to vector<8x128xf32>
    %c0_55 = arith.constant 0 : index
    %c0_56 = arith.constant 0 : index
    %108 = vector.load %arg11[%c0_55, %c0_56] : memref<128x128xf32, #tpu.memory_space<vmem>>, vector<128x128xf32>
    %cst_57 = arith.constant dense<0.000000e+00> : vector<8x128xf32>
    %109 = tpu.matmul %87, %108, %cst_57 {dimension_numbers = #tpu.dot_dimension_numbers<[1], [0], [0], [1], [0, 0, 1, 1], [], []>} : vector<8x128xf32>, vector<128x128xf32>, vector<8x128xf32> -> vector<8x128xf32>
    %c0_58 = arith.constant 0 : index
    %c0_59 = arith.constant 0 : index
    %110 = vector.load %arg12[%c0_58, %c0_59] : memref<128x128xf32, #tpu.memory_space<vmem>>, vector<128x128xf32>
    %cst_60 = arith.constant dense<0.000000e+00> : vector<8x128xf32>
    %111 = tpu.matmul %107, %110, %cst_60 {dimension_numbers = #tpu.dot_dimension_numbers<[1], [0], [0], [1], [0, 0, 1, 1], [], []>} : vector<8x128xf32>, vector<128x128xf32>, vector<8x128xf32> -> vector<8x128xf32>
    %112 = arith.addf %109, %111 : vector<8x128xf32>
    %c0_61 = arith.constant 0 : index
    %c0_62 = arith.constant 0 : index
    %113 = vector.load %arg13[%c0_61, %c0_62] : memref<1x128xf32, #tpu.memory_space<vmem>>, vector<1x128xf32>
    %114 = vector.broadcast %113 : vector<1x128xf32> to vector<8x128xf32>
    %115 = arith.addf %112, %114 : vector<8x128xf32>
    %c0_63 = arith.constant 0 : index
    %c0_64 = arith.constant 0 : index
    %116 = vector.load %arg14[%c0_63, %c0_64] : memref<8x128xf32, #tpu.memory_space<vmem>>, vector<8x128xf32>
    tpu.vector_store %arg14[%c0_63, %c0_64], %115 {strides = array<i32>} : memref<8x128xf32, #tpu.memory_space<vmem>>, vector<8x128xf32>,
    return
  }
}

</mosaic_0001>

<bundles_post_ra>
// kernel: tpu_custom_call.1
= control target key start
LH: loop header
LB: loop body
LE: loop exit
PB: predicated region body
PF: predicated region fallthrough
CT: control target
= control target key end

     0   :  { %s4206_s0 = inlined_call_operand.vmem [shape: s32[8,1], index: 0, kind: input, shape index: {}]   ;;  %s4207_s1 = inlined_call_operand.vmem [shape: f32[128,16], index: 1, kind: input, shape index: {}]   ;;  %s4208_s2 = inlined_call_operand.vmem [shape: f32[8,8,128], index: 2, kind: input, shape index: {}]   ;;  %s4209_s3 = inlined_call_operand.hbm [shape: f32[2,8,128], index: 3, kind: input, shape index: {}]   ;;  %s4210_s4 = inlined_call_operand.hbm [shape: f32[2,8,128], index: 4, kind: input, shape index: {}]   ;;  %s4211_s5 = inlined_call_operand.hbm [shape: f32[16,512], index: 5, kind: input, shape index: {}]   ;;  %s4212_s6 = inlined_call_operand.hbm [shape: f32[128,512], index: 6, kind: input, shape index: {}]   ;;  %s4213_s7 = inlined_call_operand.hbm [shape: f32[1,512], index: 7, kind: input, shape index: {}]   ;;  %s4214_s8 = inlined_call_operand.hbm [shape: f32[128,512], index: 8, kind: input, shape index: {}]   ;;  %s4215_s9 = inlined_call_operand.hbm [shape: f32[128,512], index: 9, kind: input, shape index: {}]   ;;  %s4216_s10 = inlined_call_operand.hbm [shape: f32[1,512], index: 10, kind: input, shape index: {}]   ;;  %s4217_s11 = inlined_call_operand.vmem [shape: f32[128,128], index: 11, kind: input, shape index: {}]   ;;  %s4218_s12 = inlined_call_operand.hbm [shape: f32[128,128], index: 12, kind: input, shape index: {}]   ;;  %s4219_s13 = inlined_call_operand.vmem [shape: f32[1,128], index: 13, kind: input, shape index: {}]   ;;  %s4220_s14 = inlined_call_operand.hbm [shape: f32[8,128], index: 14, kind: output, shape index: {0}]   ;;  %s4221_s15 = inlined_call_operand.hbm [shape: f32[2,8,128], index: 15, kind: output, shape index: {1}]   ;;  %s4222_s16 = inlined_call_operand.hbm [shape: f32[2,8,128], index: 16, kind: output, shape index: {2}]  }
   0x1   :  { %4224 = sst [smem:[#allocation28_spill]] %s4206_s0 }
   0x2   :  { %4225 = sst [smem:[#allocation29_spill]] %s4220_s14 }
   0x3   :  { %22 = vsyncpa [#allocation3], 0 }
   0x4   :  { %23 = vsyncpa [#allocation6], 0 }
   0x5   :  { %24 = vsyncpa [#allocation9], 0 }
   0x6   :  { %25 = vsyncpa [#allocation12], 0 }
   0x7   :  { %26 = vsyncpa [#allocation15], 0 }
   0x8   :  { %27 = vsyncpa [#allocation4], 0 }
   0x9   :  { %28 = vsyncpa [#allocation19], 0  ;;  %s3642_s21 = smov [#allocation5]   ;;  %s3364_s25 = scalar_lea.hbm %s4210_s4, 256 }
   0xa   :  { %s52_s22 = sshll.u32 %s3642_s21, 4  ;;  %p3365_p0 = scmp.ne.s32.totalorder %s4210_s4, %s3364_s25  ;;  %s53_s22 = int_to_ptr.vmem [resolvable:$true] %s52_s22 }
   0xb   :  { %p3368_p1 = scmp.lt.u32.totalorder %s3364_s25, %s4210_s4 }
   0xd   :  { %p3370_p2 = pnand %p3368_p1, %p3365_p0 }
   0xf   :  { %3373 = shalt.err (!%p3370_p2)
}
  0x10   :  { %s3374_s30 = scalar_lea.vmem %s53_s22, 256  ;;  %p3379_p4 = scmp.lt.s32.totalorder %s53_s22, %s53_s22 }
  0x11   :  { %p3375_p3 = scmp.ne.s32.totalorder %s53_s22, %s3374_s30  ;;  %p3380_p5 = scmp.lt.s32.totalorder %s3374_s30, %s3374_s30 }
  0x13   :  { %p3381_p6 = por %p3380_p5, %p3379_p4 }
  0x15   :  { %p3382_p7 = pnand %p3381_p6, %p3375_p3 }
  0x17   :  { %3385 = shalt.err (!%p3382_p7)
}
  0x18   :  { %s3643_s0 = smov 128   ;;  %s3644_s17 = smov 8  }
  0x19   :  { %58 = dma.hbm_to_vmem [thread:$0]  %s4210_s4, 256, %s53_s22, [#allocation6], %s3643_s0, %s3643_s0, %s3644_s17  }
  0x1a   :  { %s3645_s20 = smov [#allocation8]   ;;  %s3646_s23 = smov [#allocation11]  }
  0x1b   :  { %s76_s21 = sshll.u32 %s3645_s20, 4  ;;  %s98_s24 = sshll.u32 %s3646_s23, 4  ;;  %s77_s21 = int_to_ptr.vmem [resolvable:$true] %s76_s21  ;;  %s99_s24 = int_to_ptr.vmem [resolvable:$true] %s98_s24 }
  0x1c   :  { %s3386_s27 = scalar_lea.hbm %s4212_s6, 8192 }
  0x1d   :  { %p3387_p8 = scmp.ne.s32.totalorder %s4212_s6, %s3386_s27  ;;  %p3390_p9 = scmp.lt.u32.totalorder %s3386_s27, %s4212_s6 }
  0x1f   :  { %p3392_p10 = pnand %p3390_p9, %p3387_p8 }
  0x21   :  { %3395 = shalt.err (!%p3392_p10)
}
  0x22   :  { %s3396_s4 = scalar_lea.vmem %s77_s21, 8192  ;;  %p3401_p12 = scmp.lt.s32.totalorder %s77_s21, %s77_s21 }
  0x23   :  { %p3397_p11 = scmp.ne.s32.totalorder %s77_s21, %s3396_s4  ;;  %p3402_p13 = scmp.lt.s32.totalorder %s3396_s4, %s3396_s4 }
  0x25   :  { %p3403_p0 = por %p3402_p13, %p3401_p12 }
  0x27   :  { %p3404_p1 = pnand %p3403_p0, %p3397_p11 }
  0x29   :  { %3407 = shalt.err (!%p3404_p1)
}
  0x2a   :  { %s3647_s22 = smov 512   ;;  %s3648_s18 = smov 32  }
  0x2b   :  { %82 = dma.hbm_to_vmem [thread:$0]  %s4212_s6, 8192, %s77_s21, [#allocation9], %s3647_s22, %s3647_s22, %s3648_s18  }
  0x2c   :  { %s3408_s25 = scalar_lea.hbm %s4214_s8, 8192 }
  0x2d   :  { %p3409_p2 = scmp.ne.s32.totalorder %s4214_s8, %s3408_s25  ;;  %p3412_p3 = scmp.lt.u32.totalorder %s3408_s25, %s4214_s8 }
  0x2f   :  { %p3414_p4 = pnand %p3412_p3, %p3409_p2 }
  0x31   :  { %3417 = shalt.err (!%p3414_p4)
}
  0x32   :  { %s3418_s30 = scalar_lea.vmem %s99_s24, 8192  ;;  %p3423_p6 = scmp.lt.s32.totalorder %s99_s24, %s99_s24 }
  0x33   :  { %p3419_p5 = scmp.ne.s32.totalorder %s99_s24, %s3418_s30  ;;  %p3424_p7 = scmp.lt.s32.totalorder %s3418_s30, %s3418_s30 }
  0x35   :  { %p3425_p8 = por %p3424_p7, %p3423_p6 }
  0x37   :  { %p3426_p9 = pnand %p3425_p8, %p3419_p5 }
  0x39   :  { %3429 = shalt.err (!%p3426_p9)
}
  0x3a   :  { %104 = dma.hbm_to_vmem [thread:$0]  %s4214_s8, 8192, %s99_s24, [#allocation12], %s3647_s22, %s3647_s22, %s3648_s18  }
  0x3b   :  { %s3649_s4 = smov [#allocation14]   ;;  %s3650_s20 = smov [#allocation2]  }
  0x3c   :  { %s123_s19 = sshll.u32 %s3649_s4, 4  ;;  %s40_s14 = sshll.u32 %s3650_s20, 4  ;;  %s124_s19 = int_to_ptr.vmem [resolvable:$true] %s123_s19  ;;  %s41_s14 = int_to_ptr.vmem [resolvable:$true] %s40_s14 }
  0x3d   :  { %s3430_s26 = scalar_lea.hbm %s4216_s10, 64 }
  0x3e   :  { %p3431_p10 = scmp.ne.s32.totalorder %s4216_s10, %s3430_s26  ;;  %p3434_p11 = scmp.lt.u32.totalorder %s3430_s26, %s4216_s10 }
  0x40   :  { %p3436_p12 = pnand %p3434_p11, %p3431_p10 }
  0x42   :  { %3439 = shalt.err (!%p3436_p12)
}
  0x43   :  { %s3440_s8 = scalar_lea.vmem %s124_s19, 64  ;;  %p3445_p0 = scmp.lt.s32.totalorder %s124_s19, %s124_s19 }
  0x44   :  { %p3441_p13 = scmp.ne.s32.totalorder %s124_s19, %s3440_s8  ;;  %p3446_p1 = scmp.lt.s32.totalorder %s3440_s8, %s3440_s8 }
  0x46   :  { %p3447_p2 = por %p3446_p1, %p3445_p0 }
  0x48   :  { %p3448_p3 = pnand %p3447_p2, %p3441_p13 }
  0x4a   :  { %3451 = shalt.err (!%p3448_p3)
}
  0x4b   :  { %126 = dma.hbm_to_vmem [thread:$0]  %s4216_s10, 64, %s124_s19, [#allocation15]  }
  0x4c   :  { %s3452_s20 = scalar_lea.hbm %s4209_s3, 256 }
  0x4d   :  { %p3453_p4 = scmp.ne.s32.totalorder %s4209_s3, %s3452_s20  ;;  %p3456_p5 = scmp.lt.u32.totalorder %s3452_s20, %s4209_s3 }
  0x4f   :  { %p3458_p6 = pnand %p3456_p5, %p3453_p4 }
  0x51   :  { %3461 = shalt.err (!%p3458_p6)
}
  0x52   :  { %s3462_s28 = scalar_lea.vmem %s41_s14, 256  ;;  %p3467_p8 = scmp.lt.s32.totalorder %s41_s14, %s41_s14 }
  0x53   :  { %p3463_p7 = scmp.ne.s32.totalorder %s41_s14, %s3462_s28  ;;  %p3468_p9 = scmp.lt.s32.totalorder %s3462_s28, %s3462_s28 }
  0x55   :  { %p3469_p10 = por %p3468_p9, %p3467_p8 }
  0x57   :  { %p3470_p11 = pnand %p3469_p10, %p3463_p7 }
  0x59   :  { %3473 = shalt.err (!%p3470_p11)
}
  0x5a   :  { %46 = dma.hbm_to_vmem [thread:$0]  %s4209_s3, 256, %s41_s14, [#allocation3], %s3643_s0, %s3643_s0, %s3644_s17  }
  0x5b   :  { %s3651_s29 = smov [#allocation7]   ;;  %s3652_s8 = smov [#allocation10]  }
  0x5c   :  { %s64_s30 = sshll.u32 %s3651_s29, 4  ;;  %s89_s24 = sshll.u32 %s3652_s8, 4  ;;  %s65_s30 = int_to_ptr.vmem [resolvable:$true] %s64_s30  ;;  %s90_s24 = int_to_ptr.vmem [resolvable:$true] %s89_s24 }
  0x5d   :  { %s3474_s4 = scalar_lea.hbm %s4211_s5, 1024 }
  0x5e   :  { %p3475_p12 = scmp.ne.s32.totalorder %s4211_s5, %s3474_s4  ;;  %p3478_p13 = scmp.lt.u32.totalorder %s3474_s4, %s4211_s5 }
  0x60   :  { %p3480_p0 = pnand %p3478_p13, %p3475_p12 }
  0x62   :  { %3483 = shalt.err (!%p3480_p0)
}
  0x63   :  { %s3484_s3 = scalar_lea.vmem %s65_s30, 1024  ;;  %p3489_p2 = scmp.lt.s32.totalorder %s65_s30, %s65_s30 }
  0x64   :  { %p3485_p1 = scmp.ne.s32.totalorder %s65_s30, %s3484_s3  ;;  %p3490_p3 = scmp.lt.s32.totalorder %s3484_s3, %s3484_s3 }
  0x66   :  { %p3491_p4 = por %p3490_p3, %p3489_p2 }
  0x68   :  { %p3492_p5 = pnand %p3491_p4, %p3485_p1 }
  0x6a   :  { %3495 = shalt.err (!%p3492_p5)
}
  0x6b   :  { %70 = dma.hbm_to_vmem [thread:$0]  %s4211_s5, 1024, %s65_s30, [#allocation6], %s3647_s22, %s3647_s22, %s3648_s18  }
  0x6c   :  { %s3496_s19 = scalar_lea.hbm %s4213_s7, 64 }
  0x6d   :  { %p3497_p6 = scmp.ne.s32.totalorder %s4213_s7, %s3496_s19  ;;  %p3500_p7 = scmp.lt.u32.totalorder %s3496_s19, %s4213_s7 }
  0x6f   :  { %p3502_p8 = pnand %p3500_p7, %p3497_p6 }
  0x71   :  { %3505 = shalt.err (!%p3502_p8)
}
  0x72   :  { %s3506_s4 = scalar_lea.vmem %s90_s24, 64  ;;  %p3511_p10 = scmp.lt.s32.totalorder %s90_s24, %s90_s24 }
  0x73   :  { %p3507_p9 = scmp.ne.s32.totalorder %s90_s24, %s3506_s4  ;;  %p3512_p11 = scmp.lt.s32.totalorder %s3506_s4, %s3506_s4 }
  0x75   :  { %p3513_p12 = por %p3512_p11, %p3511_p10 }
  0x77   :  { %p3514_p13 = pnand %p3513_p12, %p3507_p9 }
  0x79   :  { %3517 = shalt.err (!%p3514_p13)
}
  0x7a   :  { %92 = dma.hbm_to_vmem [thread:$0]  %s4213_s7, 64, %s90_s24, [#allocation9]  }
  0x7b   :  { %s3653_s20 = smov [#allocation13]   ;;  %s3654_s25 = smov [#allocation16]  }
  0x7c   :  { %s110_s23 = sshll.u32 %s3653_s20, 4  ;;  %s134_s26 = sshll.u32 %s3654_s25, 4  ;;  %s111_s23 = int_to_ptr.vmem [resolvable:$true] %s110_s23  ;;  %s135_s26 = int_to_ptr.vmem [resolvable:$true] %s134_s26 }
  0x7d   :  { %s3518_s27 = scalar_lea.hbm %s4215_s9, 8192 }
  0x7e   :  { %p3519_p0 = scmp.ne.s32.totalorder %s4215_s9, %s3518_s27  ;;  %p3522_p1 = scmp.lt.u32.totalorder %s3518_s27, %s4215_s9 }
  0x80   :  { %p3524_p2 = pnand %p3522_p1, %p3519_p0 }
  0x82   :  { %3527 = shalt.err (!%p3524_p2)
}
  0x83   :  { %s3528_s7 = scalar_lea.vmem %s111_s23, 8192  ;;  %p3533_p4 = scmp.lt.s32.totalorder %s111_s23, %s111_s23 }
  0x84   :  { %p3529_p3 = scmp.ne.s32.totalorder %s111_s23, %s3528_s7  ;;  %p3534_p5 = scmp.lt.s32.totalorder %s3528_s7, %s3528_s7 }
  0x86   :  { %p3535_p6 = por %p3534_p5, %p3533_p4 }
  0x88   :  { %p3536_p7 = pnand %p3535_p6, %p3529_p3 }
  0x8a   :  { %3539 = shalt.err (!%p3536_p7)
}
  0x8b   :  { %116 = dma.hbm_to_vmem [thread:$0]  %s4215_s9, 8192, %s111_s23, [#allocation12], %s3647_s22, %s3647_s22, %s3648_s18  }
  0x8c   :  { %s3540_s4 = scalar_lea.hbm %s4218_s12, 2048 }
  0x8d   :  { %p3541_p8 = scmp.ne.s32.totalorder %s4218_s12, %s3540_s4  ;;  %p3544_p9 = scmp.lt.u32.totalorder %s3540_s4, %s4218_s12 }
  0x8f   :  { %p3546_p10 = pnand %p3544_p9, %p3541_p8 }
  0x91   :  { %3549 = shalt.err (!%p3546_p10)
}
  0x92   :  { %s3550_s3 = scalar_lea.vmem %s135_s26, 2048  ;;  %p3555_p12 = scmp.lt.s32.totalorder %s135_s26, %s135_s26 }
  0x93   :  { %p3551_p11 = scmp.ne.s32.totalorder %s135_s26, %s3550_s3  ;;  %p3556_p13 = scmp.lt.s32.totalorder %s3550_s3, %s3550_s3 }
  0x95   :  { %p3557_p0 = por %p3556_p13, %p3555_p12 }
  0x97   :  { %p3558_p1 = pnand %p3557_p0, %p3551_p11 }
  0x99   :  { %3561 = shalt.err (!%p3558_p1)
}
  0x9a   :  { %140 = dma.hbm_to_vmem [thread:$0]  %s4218_s12, 2048, %s135_s26, [#allocation15], %s3643_s0, %s3643_s0, %s3644_s17  }
  0x9b   :  { %3628 = dma.done.wait [#allocation3], 256  }
  0x9c   :  { %3629 = vsyncadd [#allocation3], 4294967040 }
  0x9d   :  { %3630 = dma.done.wait [#allocation6], 1280  }
  0x9e   :  { %3631 = vsyncadd [#allocation6], 4294966016 }
  0x9f   :  { %3632 = dma.done.wait [#allocation9], 8256  }
  0xa0   :  { %3633 = vsyncadd [#allocation9], 4294959040 }
  0xa1   :  { %3634 = dma.done.wait [#allocation12], 16384  }
  0xa2   :  { %3635 = vsyncadd [#allocation12], 4294950912 }
  0xa3   :  { %3636 = dma.done.wait [#allocation15], 2112  }
  0xa4   :  { %3637 = vsyncadd [#allocation15], 4294965184  ;;  %v3655_v0 = vmov 0   ;;  %v3656_v1 = vmov 0.0|0.0   ;;  %s4226_s14 = sld [smem:[#allocation28_spill]]  ;;  %v179_v3 = vld [vmem:[%s4207_s1] sm:$0xff] }
  0xa5   :  { %3299 = vset.pattern.permute.xlu0 %v3655_v0  ;;  %2997 = vmatprep.subr.bf16.mxu0 %v3656_v1  ;;  %v180_v4 = vld [vmem:[%s4207_s1 + $0x8] sm:$0xff]  ;;  %v181_v6 = vld [vmem:[%s4207_s1 + $0x10] sm:$0xff]  ;;  %v182_v7 = vld [vmem:[%s4207_s1 + $0x18] sm:$0xff]  ;;  %vm3657_vm0 = vmmov 0   ;;  %v3658_v8 = vmov 0.0   ;;  %vm482_vm2 = vcmask 130048  }
  0xa6   :  { %v2998_v5 = vpack.c.bf16 %v180_v4, %v179_v3  ;;  %2844 = vmatprep.mubr.msk.f32.mxu0 %vm3657_vm0, %v3658_v8  ;;  %404 = vmatprep.mubr.f32.mxu1 %v3658_v8  ;;  %v3001_v9 = vpack.c.bf16 %v182_v7, %v181_v6  ;;  %v183_v10 = vld [vmem:[%s4207_s1 + $0x20] sm:$0xff]  ;;  %v184_v11 = vld [vmem:[%s4207_s1 + $0x28] sm:$0xff]  ;;  %v274_v12 = vld [vmem:[#allocation8 + $0x8] sm:$0xff]  ;;  %vm1775_vm3 = vcmask 57344   ;;  %vm1864_vm4 = vcmask 64512  }
  0xa7   :  { %v278_v13 = vld [vmem:[#allocation8 + $0x28] sm:$0xff]  ;;  %v273_v14 = vld [vmem:[#allocation8] sm:$0xff]  ;;  %v3004_v16 = vpack.c.bf16 %v184_v11, %v183_v10  ;;  %v186_v20 = vld [vmem:[%s4207_s1 + $0x38] sm:$0xff]  ;;  %vm2490_vm5 = vcmask 1041409   ;;  %vm2493_vm6 = vcmask 1042434   ;;  %vm2496_vm7 = vcmask 1043459  }
  0xa8   :  { %2999 = vmatpush3.bf16.msra.mxu0 %v2998_v5  ;;  %v277_v15 = vld [vmem:[#allocation8 + $0x20] sm:$0xff]  ;;  %v185_v17 = vld [vmem:[%s4207_s1 + $0x30] sm:$0xff]  ;;  %v3021_v18 = vpack.c.bf16 %v278_v13, %v274_v12  ;;  %v187_v31 = vld [vmem:[%s4207_s1 + $0x40] sm:$0xff]  ;;  %vm2499_vm8 = vcmask 1044484   ;;  %vm2502_vm9 = vcmask 1045509   ;;  %vm2505_vm10 = vcmask 1046534  }
  0xa9   :  { %3000 = vmatprep.subr.bf16.mxu0 %v3656_v1  ;;  %v3023_v19 = vpack.c.bf16 %v277_v15, %v273_v14  ;;  %v282_v21 = vld [vmem:[#allocation8 + $0x48] sm:$0xff]  ;;  %v281_v24 = vld [vmem:[#allocation8 + $0x40] sm:$0xff]  ;;  %v3007_v27 = vpack.c.bf16 %v186_v20, %v185_v17  ;;  %v190_v43 = vld [vmem:[%s4207_s1 + $0x58] sm:$0xff]  ;;  %vm2508_vm11 = vcmask 1047559  }
  0xaa   :  { %v170_v2 = vld [vmem:[%s4226_s14] sm:$0xff]  ;;  %v286_v22 = vld [vmem:[#allocation8 + $0x68] sm:$0xff]  ;;  %3022 = vmatprep.subr.bf16.mxu1 %v3021_v18  ;;  %v285_v25 = vld [vmem:[#allocation8 + $0x60] sm:$0xff] }
  0xab   :  { %174 = vperm.xlu0 %3299, %v170_v2   ;;  %v3025_v23 = vpack.c.bf16 %v286_v22, %v282_v21  ;;  %3024 = vmatpush1.bf16.msra.mxu1 %v3023_v19  ;;  %v3027_v26 = vpack.c.bf16 %v285_v25, %v281_v24  ;;  %v290_v28 = vld [vmem:[#allocation8 + $0x88] sm:$0xff]  ;;  %v289_v30 = vld [vmem:[#allocation8 + $0x80] sm:$0xff]  ;;  %v191_v48 = vld [vmem:[%s4207_s1 + $0x60] sm:$0xff]  ;;  %v171_v24 = vlaneseq }
  0xac   :  { %3002 = vmatpush3.bf16.msra.mxu0 %v3001_v9  ;;  %v294_v29 = vld [vmem:[#allocation8 + $0xa8] sm:$0xff]  ;;  %v188_v32 = vld [vmem:[%s4207_s1 + $0x48] sm:$0xff]  ;;  %v194_v61 = vld [vmem:[%s4207_s1 + $0x78] sm:$0xff] }
  0xad   :  { %3003 = vmatprep.subr.bf16.mxu0 %v3656_v1  ;;  %3026 = vmatprep.subr.bf16.mxu1 %v3025_v23  ;;  %v3029_v33 = vpack.c.bf16 %v294_v29, %v290_v28  ;;  %v293_v34 = vld [vmem:[#allocation8 + $0xa0] sm:$0xff]  ;;  %v298_v35 = vld [vmem:[#allocation8 + $0xc8] sm:$0xff]  ;;  %v3010_v38 = vpack.c.bf16 %v188_v32, %v187_v31  ;;  %v276_v0 = vld [vmem:[#allocation8 + $0x18] sm:$0xff] }
  0xae   :  { %v3031_v36 = vpack.c.bf16 %v293_v34, %v289_v30  ;;  %v302_v37 = vld [vmem:[#allocation8 + $0xe8] sm:$0xff]  ;;  %v297_v41 = vld [vmem:[#allocation8 + $0xc0] sm:$0xff]  ;;  %v280_v2 = vld [vmem:[#allocation8 + $0x38] sm:$0xff] }
  0xaf   :  { %3028 = vmatpush1.bf16.msra.mxu1 %v3027_v26  ;;  %v189_v39 = vld [vmem:[%s4207_s1 + $0x50] sm:$0xff]  ;;  %v3033_v40 = vpack.c.bf16 %v302_v37, %v298_v35  ;;  %v301_v42 = vld [vmem:[#allocation8 + $0xe0] sm:$0xff]  ;;  %v3053_v9 = vpack.c.bf16 %v280_v2, %v276_v0  ;;  %v275_v25 = vld [vmem:[#allocation8 + $0x10] sm:$0xff]  ;;  %v3659_v37 = vmov 1.0  }
  0xb0   :  { %3005 = vmatpush3.bf16.msra.mxu0 %v3004_v16  ;;  %3030 = vmatprep.subr.bf16.mxu1 %v3029_v33  ;;  %v306_v44 = vld [vmem:[#allocation8 + $0x108] sm:$0xff]  ;;  %v3035_v46 = vpack.c.bf16 %v301_v42, %v297_v41  ;;  %v3013_v47 = vpack.c.bf16 %v190_v43, %v189_v39  ;;  %v305_v50 = vld [vmem:[#allocation8 + $0x100] sm:$0xff]  ;;  %v279_v26 = vld [vmem:[#allocation8 + $0x30] sm:$0xff] }
  0xb1   :  { %3006 = vmatprep.subr.bf16.mxu0 %v3656_v1  ;;  %v310_v45 = vld [vmem:[#allocation8 + $0x128] sm:$0xff]  ;;  %v309_v51 = vld [vmem:[#allocation8 + $0x120] sm:$0xff]  ;;  %v284_v28 = vld [vmem:[#allocation8 + $0x58] sm:$0xff]  ;;  %v3055_v30 = vpack.c.bf16 %v279_v26, %v275_v25 }
  0xb2   :  { %v3037_v49 = vpack.c.bf16 %v310_v45, %v306_v44  ;;  %v192_v52 = vld [vmem:[%s4207_s1 + $0x68] sm:$0xff]  ;;  %v314_v53 = vld [vmem:[#allocation8 + $0x148] sm:$0xff]  ;;  %v3039_v55 = vpack.c.bf16 %v309_v51, %v305_v50  ;;  %v288_v29 = vld [vmem:[#allocation8 + $0x78] sm:$0xff] }
  0xb3   :  { %3032 = vmatpush1.bf16.msra.mxu1 %v3031_v36  ;;  %v318_v54 = vld [vmem:[#allocation8 + $0x168] sm:$0xff]  ;;  %v3016_v56 = vpack.c.bf16 %v192_v52, %v191_v48  ;;  %v313_v59 = vld [vmem:[#allocation8 + $0x140] sm:$0xff]  ;;  %v3057_v32 = vpack.c.bf16 %v288_v29, %v284_v28  ;;  %v283_v33 = vld [vmem:[#allocation8 + $0x50] sm:$0xff] }
  0xb4   :  { %3008 = vmatpush3.bf16.msra.mxu0 %v3007_v27  ;;  %3034 = vmatprep.subr.bf16.mxu1 %v3033_v40  ;;  %v193_v57 = vld [vmem:[%s4207_s1 + $0x70] sm:$0xff]  ;;  %v3041_v58 = vpack.c.bf16 %v318_v54, %v314_v53  ;;  %v317_v60 = vld [vmem:[#allocation8 + $0x160] sm:$0xff]  ;;  %v172_v27 = vand.u32 127, %v171_v24  ;;  %v287_v34 = vld [vmem:[#allocation8 + $0x70] sm:$0xff] }
  0xb5   :  { %3009 = vmatprep.subr.bf16.mxu0 %v3656_v1  ;;  %v322_v62 = vld [vmem:[#allocation8 + $0x188] sm:$0xff]  ;;  %v3043_v3 = vpack.c.bf16 %v317_v60, %v313_v59  ;;  %v3019_v4 = vpack.c.bf16 %v194_v61, %v193_v57  ;;  %v321_v6 = vld [vmem:[#allocation8 + $0x180] sm:$0xff]  ;;  %v292_v35 = vld [vmem:[#allocation8 + $0x98] sm:$0xff] }
  0xb6   :  { %v326_v63 = vld [vmem:[#allocation8 + $0x1a8] sm:$0xff]  ;;  %v325_v7 = vld [vmem:[#allocation8 + $0x1a0] sm:$0xff]  ;;  %v296_v36 = vld [vmem:[#allocation8 + $0xb8] sm:$0xff] }
  0xb7   :  { %3036 = vmatpush1.bf16.msra.mxu1 %v3035_v46  ;;  %v3045_v5 = vpack.c.bf16 %v326_v63, %v322_v62  ;;  %v330_v10 = vld [vmem:[#allocation8 + $0x1c8] sm:$0xff]  ;;  %v3047_v12 = vpack.c.bf16 %v325_v7, %v321_v6  ;;  %v329_v14 = vld [vmem:[#allocation8 + $0x1c0] sm:$0xff]  ;;  %v3061_v39 = vpack.c.bf16 %v296_v36, %v292_v35  ;;  %v291_v40 = vld [vmem:[#allocation8 + $0x90] sm:$0xff] }
  0xb8   :  { %3011 = vmatpush3.bf16.msra.mxu0 %v3010_v38  ;;  %3038 = vmatprep.subr.bf16.mxu1 %v3037_v49  ;;  %v334_v11 = vld [vmem:[#allocation8 + $0x1e8] sm:$0xff]  ;;  %v333_v15 = vld [vmem:[#allocation8 + $0x1e0] sm:$0xff]  ;;  %v3059_v38 = vpack.c.bf16 %v287_v34, %v283_v33  ;;  %v295_v41 = vld [vmem:[#allocation8 + $0xb0] sm:$0xff] }
  0xb9   :  { %3012 = vmatprep.subr.bf16.mxu0 %v3656_v1  ;;  %v3049_v13 = vpack.c.bf16 %v334_v11, %v330_v10  ;;  %v266_v16 = vld [vmem:[#allocation7 + $0x8] sm:$0xff]  ;;  %v3051_v18 = vpack.c.bf16 %v333_v15, %v329_v14  ;;  %v265_v20 = vld [vmem:[#allocation7] sm:$0xff]  ;;  %v300_v42 = vld [vmem:[#allocation8 + $0xd8] sm:$0xff]  ;;  %v3063_v44 = vpack.c.bf16 %v295_v41, %v291_v40 }
  0xba   :  { %v270_v17 = vld [vmem:[#allocation7 + $0x28] sm:$0xff]  ;;  %v269_v21 = vld [vmem:[#allocation7 + $0x20] sm:$0xff]  ;;  %v304_v43 = vld [vmem:[#allocation8 + $0xf8] sm:$0xff] }
  0xbb   :  { %3040 = vmatpush1.bf16.msra.mxu1 %v3039_v55  ;;  %v3085_v19 = vpack.c.bf16 %v270_v17, %v266_v16  ;;  %v3940_v22 = vld [vmem:[#allocation2] sm:$0xff]  ;;  %v3087_v23 = vpack.c.bf16 %v269_v21, %v265_v20  ;;  %v3065_v45 = vpack.c.bf16 %v304_v43, %v300_v42  ;;  %v299_v46 = vld [vmem:[#allocation8 + $0xd0] sm:$0xff]  ;;  %v308_v48 = vld [vmem:[#allocation8 + $0x118] sm:$0xff] }
  0xbc   :  { %3014 = vmatpush3.bf16.msra.mxu0 %v3013_v47  ;;  %3042 = vmatprep.subr.bf16.mxu1 %v3041_v58  ;;  %v303_v47 = vld [vmem:[#allocation8 + $0xf0] sm:$0xff]  ;;  %v312_v49 = vld [vmem:[#allocation8 + $0x138] sm:$0xff]  ;;  %v743_v25 = vld [vmem:[#allocation13] sm:$0xff] }
  0xbd   :  { %3015 = vmatprep.subr.bf16.mxu0 %v3656_v1  ;;  %v3067_v50 = vpack.c.bf16 %v303_v47, %v299_v46  ;;  %v3069_v51 = vpack.c.bf16 %v312_v49, %v308_v48  ;;  %v307_v52 = vld [vmem:[#allocation8 + $0x110] sm:$0xff]  ;;  %v316_v54 = vld [vmem:[#allocation8 + $0x158] sm:$0xff]  ;;  %v747_v26 = vld [vmem:[#allocation13 + $0x20] sm:$0xff] }
  0xbe   :  { %v311_v53 = vld [vmem:[#allocation8 + $0x130] sm:$0xff]  ;;  %v320_v55 = vld [vmem:[#allocation8 + $0x178] sm:$0xff]  ;;  %v751_v34 = vld [vmem:[#allocation13 + $0x40] sm:$0xff] }
  0xbf   :  { %3044 = vmatpush1.bf16.msra.mxu1 %v3043_v3  ;;  %v3073_v57 = vpack.c.bf16 %v320_v55, %v316_v54  ;;  %v315_v58 = vld [vmem:[#allocation8 + $0x150] sm:$0xff]  ;;  %v324_v60 = vld [vmem:[#allocation8 + $0x198] sm:$0xff]  ;;  %v755_v35 = vld [vmem:[#allocation13 + $0x60] sm:$0xff] }
  0xc0   :  { %3017 = vmatpush3.bf16.msra.mxu0 %v3016_v56  ;;  %3046 = vmatprep.subr.bf16.mxu1 %v3045_v5  ;;  %v3071_v56 = vpack.c.bf16 %v311_v53, %v307_v52  ;;  %v319_v59 = vld [vmem:[#allocation8 + $0x170] sm:$0xff]  ;;  %v328_v61 = vld [vmem:[#allocation8 + $0x1b8] sm:$0xff]  ;;  %v3099_v46 = vpack.c.bf16 %v755_v35, %v751_v34  ;;  %v759_v48 = vld [vmem:[#allocation13 + $0x80] sm:$0xff] }
  0xc1   :  { %3018 = vmatprep.subr.bf16.mxu0 %v3656_v1  ;;  %v3075_v62 = vpack.c.bf16 %v319_v59, %v315_v58  ;;  %v3077_v63 = vpack.c.bf16 %v328_v61, %v324_v60  ;;  %v323_v0 = vld [vmem:[#allocation8 + $0x190] sm:$0xff]  ;;  %v332_v3 = vld [vmem:[#allocation8 + $0x1d8] sm:$0xff]  ;;  %v763_v49 = vld [vmem:[#allocation13 + $0xa0] sm:$0xff] }
  0xc2   :  { %v327_v2 = vld [vmem:[#allocation8 + $0x1b0] sm:$0xff]  ;;  %v268_v10 = vld [vmem:[#allocation7 + $0x18] sm:$0xff]  ;;  %v3103_v58 = vpack.c.bf16 %v763_v49, %v759_v48  ;;  %v767_v60 = vld [vmem:[#allocation13 + $0xc0] sm:$0xff] }
  0xc3   :  { %3048 = vmatpush1.bf16.msra.mxu1 %v3047_v12  ;;  %v3079_v5 = vpack.c.bf16 %v327_v2, %v323_v0  ;;  %v331_v7 = vld [vmem:[#allocation8 + $0x1d0] sm:$0xff]  ;;  %v272_v11 = vld [vmem:[#allocation7 + $0x38] sm:$0xff]  ;;  %v771_v61 = vld [vmem:[#allocation13 + $0xe0] sm:$0xff] }
  0xc4   :  { %3020 = vmatpush3.bf16.msra.mxu0 %v3019_v4  ;;  %3050 = vmatprep.subr.bf16.mxu1 %v3049_v13  ;;  %v336_v4 = vld [vmem:[#allocation8 + $0x1f8] sm:$0xff]  ;;  %v3089_v13 = vpack.c.bf16 %v272_v11, %v268_v10  ;;  %v267_v14 = vld [vmem:[#allocation7 + $0x10] sm:$0xff]  ;;  %v799_v48 = vld [vmem:[#allocation13 + $0x1c0] sm:$0xff] }
  0xc5   :  { %3054 = vmatprep.subr.bf16.mxu0 %v3053_v9  ;;  %v3081_v6 = vpack.c.bf16 %v336_v4, %v332_v3  ;;  %v335_v9 = vld [vmem:[#allocation8 + $0x1f0] sm:$0xff]  ;;  %v750_v21 = vld [vmem:[#allocation13 + $0x38] sm:$0xff]  ;;  %v803_v49 = vld [vmem:[#allocation13 + $0x1e0] sm:$0xff] }
  0xc6   :  { %v3083_v12 = vpack.c.bf16 %v335_v9, %v331_v7  ;;  %v271_v15 = vld [vmem:[#allocation7 + $0x30] sm:$0xff]  ;;  %v762_v43 = vld [vmem:[#allocation13 + $0x98] sm:$0xff]  ;;  %v3107_v7 = vpack.c.bf16 %v771_v61, %v767_v60  ;;  %v679_v60 = vld [vmem:[#allocation11] sm:$0xff] }
  0xc7   :  { %3052 = vmatpush1.bf16.msra.mxu1 %v3051_v18  ;;  %v3091_v16 = vpack.c.bf16 %v271_v15, %v267_v14  ;;  %v744_v17 = vld [vmem:[#allocation13 + $0x8] sm:$0xff]  ;;  %v749_v28 = vld [vmem:[#allocation13 + $0x30] sm:$0xff]  ;;  %v798_v35 = vld [vmem:[#allocation13 + $0x1b8] sm:$0xff] }
  0xc8   :  { %3086 = vmatprep.subr.bf16.mxu1 %v3085_v19  ;;  %v748_v18 = vld [vmem:[#allocation13 + $0x28] sm:$0xff]  ;;  %v746_v19 = vld [vmem:[#allocation13 + $0x18] sm:$0xff]  ;;  %v761_v52 = vld [vmem:[#allocation13 + $0x90] sm:$0xff] }
  0xc9   :  { %v3093_v20 = vpack.c.bf16 %v748_v18, %v744_v17  ;;  %v752_v29 = vld [vmem:[#allocation13 + $0x48] sm:$0xff]  ;;  %v765_v53 = vld [vmem:[#allocation13 + $0xb0] sm:$0xff]  ;;  %v683_v61 = vld [vmem:[#allocation11 + $0x20] sm:$0xff] }
  0xca   :  { %405 = vmatmul.mubr.f32.vlgmr.msra.gmra.mrb[0].mxu1 %v3940_v22  ;;  %v760_v40 = vld [vmem:[#allocation13 + $0x88] sm:$0xff]  ;;  %v3135_v59 = vpack.c.bf16 %v765_v53, %v761_v52  ;;  %v769_v0 = vld [vmem:[#allocation13 + $0xd0] sm:$0xff] }
  0xcb   :  { %3088 = vmatpush1.bf16.msra.mxu1 %v3087_v23  ;;  %550 = vmatprep.mubr.f32.mxu1 %v3658_v8  ;;  %v3125_v23 = vpack.c.bf16 %v750_v21, %v746_v19  ;;  %v764_v42 = vld [vmem:[#allocation13 + $0xa8] sm:$0xff]  ;;  %v773_v2 = vld [vmem:[#allocation13 + $0xf0] sm:$0xff] }
  0xcc   :  { %3094 = vmatprep.subr.bf16.mxu1 %v3093_v20  ;;  %v768_v54 = vld [vmem:[#allocation13 + $0xc8] sm:$0xff]  ;;  %v3139_v9 = vpack.c.bf16 %v773_v2, %v769_v0  ;;  %v777_v14 = vld [vmem:[#allocation13 + $0x110] sm:$0xff]  ;;  %v786_v20 = vld [vmem:[#allocation13 + $0x158] sm:$0xff] }
  0xcd   :  { %v772_v55 = vld [vmem:[#allocation13 + $0xe8] sm:$0xff]  ;;  %v801_v52 = vld [vmem:[#allocation13 + $0x1d0] sm:$0xff] }
  0xce   :  { %v776_v3 = vld [vmem:[#allocation13 + $0x108] sm:$0xff]  ;;  %v805_v53 = vld [vmem:[#allocation13 + $0x1f0] sm:$0xff] }
  0xcf   :  { %v780_v4 = vld [vmem:[#allocation13 + $0x128] sm:$0xff]  ;;  %v681_v0 = vld [vmem:[#allocation11 + $0x10] sm:$0xff] }
  0xd0   :  { %v3109_v10 = vpack.c.bf16 %v780_v4, %v776_v3  ;;  %v784_v18 = vld [vmem:[#allocation13 + $0x148] sm:$0xff]  ;;  %v685_v2 = vld [vmem:[#allocation11 + $0x30] sm:$0xff] }
  0xd1   :  { %v788_v19 = vld [vmem:[#allocation13 + $0x168] sm:$0xff]  ;;  %v3191_v4 = vpack.c.bf16 %v685_v2, %v681_v0  ;;  %v721_v0 = vld [vmem:[#allocation11 + $0x150] sm:$0xff] }
  0xd2   :  { %v3113_v21 = vpack.c.bf16 %v788_v19, %v784_v18  ;;  %v809_v3 = vld [vmem:[#allocation2 + $0x8] sm:$0xff]  ;;  %v725_v2 = vld [vmem:[#allocation11 + $0x170] sm:$0xff] }
  0xd3   :  { %v696_v18 = vld [vmem:[#allocation11 + $0x88] sm:$0xff] }
  0xd4   :  { %v700_v19 = vld [vmem:[#allocation11 + $0xa8] sm:$0xff] }
 0x12a   :  { %v175_v31 = vpop.permute.xlu0 %174 }
 0x12b   :  { %vm176_vm1 = vcmp.eq.s32.totalorder %v172_v27, %v175_v31  ;;  %v745_v27 = vld [vmem:[#allocation13 + $0x10] sm:$0xff]  ;;  %v754_v31 = vld [vmem:[#allocation13 + $0x58] sm:$0xff] }
 0x12c   :  { %2845 = vmatmul.mubr.msk.f32.vlgmr.msra.gmra.mrb[0].mxu0 %vm176_vm1, %v3659_v37  ;;  %v3127_v33 = vpack.c.bf16 %v749_v28, %v745_v27 }
 0x12d   :  { %3056 = vmatpush1.bf16.msra.mxu0 %v3055_v30  ;;  %475 = vmatprep.mubr.f32.mxu0 %v3658_v8  ;;  %v756_v30 = vld [vmem:[#allocation13 + $0x68] sm:$0xff] }
 0x12e   :  { %3058 = vmatprep.subr.bf16.mxu0 %v3057_v32  ;;  %v758_v32 = vld [vmem:[#allocation13 + $0x78] sm:$0xff]  ;;  %v3097_v36 = vpack.c.bf16 %v756_v30, %v752_v29  ;;  %v785_v29 = vld [vmem:[#allocation13 + $0x150] sm:$0xff] }
 0x12f   :  { %v3129_v37 = vpack.c.bf16 %v758_v32, %v754_v31  ;;  %v789_v30 = vld [vmem:[#allocation13 + $0x170] sm:$0xff]  ;;  %v792_v32 = vld [vmem:[#allocation13 + $0x188] sm:$0xff] }
 0x130   :  { %v3147_v31 = vpack.c.bf16 %v789_v30, %v785_v29  ;;  %v697_v29 = vld [vmem:[#allocation11 + $0x90] sm:$0xff] }
 0x131   :  { %3060 = vmatpush1.bf16.msra.mxu0 %v3059_v38  ;;  %v753_v38 = vld [vmem:[#allocation13 + $0x50] sm:$0xff] }
 0x132   :  { %3062 = vmatprep.subr.bf16.mxu0 %v3061_v39  ;;  %v757_v39 = vld [vmem:[#allocation13 + $0x70] sm:$0xff] }
 0x133   :  { %v3131_v47 = vpack.c.bf16 %v757_v39, %v753_v38  ;;  %v701_v30 = vld [vmem:[#allocation11 + $0xb0] sm:$0xff] }
 0x135   :  { %3064 = vmatpush1.bf16.msra.mxu0 %v3063_v44  ;;  %v766_v44 = vld [vmem:[#allocation13 + $0xb8] sm:$0xff] }
 0x136   :  { %3066 = vmatprep.subr.bf16.mxu0 %v3065_v45 }
 0x139   :  { %3068 = vmatpush1.bf16.msra.mxu0 %v3067_v50  ;;  %v3101_v50 = vpack.c.bf16 %v764_v42, %v760_v40  ;;  %v793_v40 = vld [vmem:[#allocation13 + $0x190] sm:$0xff] }
 0x13a   :  { %3070 = vmatprep.subr.bf16.mxu0 %v3069_v51  ;;  %v3133_v51 = vpack.c.bf16 %v766_v44, %v762_v43  ;;  %v800_v43 = vld [vmem:[#allocation13 + $0x1c8] sm:$0xff] }
 0x13b   :  { %v804_v44 = vld [vmem:[#allocation13 + $0x1e8] sm:$0xff] }
 0x13d   :  { %3072 = vmatpush1.bf16.msra.mxu0 %v3071_v56  ;;  %v770_v56 = vld [vmem:[#allocation13 + $0xd8] sm:$0xff] }
 0x13e   :  { %3074 = vmatprep.subr.bf16.mxu0 %v3073_v57  ;;  %v774_v57 = vld [vmem:[#allocation13 + $0xf8] sm:$0xff] }
 0x141   :  { %3076 = vmatpush1.bf16.msra.mxu0 %v3075_v62  ;;  %v3105_v62 = vpack.c.bf16 %v772_v55, %v768_v54  ;;  %v3155_v54 = vpack.c.bf16 %v805_v53, %v801_v52  ;;  %v680_v55 = vld [vmem:[#allocation11 + $0x8] sm:$0xff]  ;;  %v717_v52 = vld [vmem:[#allocation11 + $0x130] sm:$0xff] }
 0x142   :  { %3078 = vmatprep.subr.bf16.mxu0 %v3077_v63  ;;  %v3137_v63 = vpack.c.bf16 %v774_v57, %v770_v56  ;;  %v684_v56 = vld [vmem:[#allocation11 + $0x28] sm:$0xff]  ;;  %v682_v57 = vld [vmem:[#allocation11 + $0x18] sm:$0xff] }
 0x145   :  { %3080 = vmatpush1.bf16.msra.mxu0 %v3079_v5  ;;  %v778_v5 = vld [vmem:[#allocation13 + $0x118] sm:$0xff] }
 0x146   :  { %3082 = vmatprep.subr.bf16.mxu0 %v3081_v6  ;;  %v782_v6 = vld [vmem:[#allocation13 + $0x138] sm:$0xff] }
 0x147   :  { %v3141_v11 = vpack.c.bf16 %v782_v6, %v778_v5  ;;  %v688_v5 = vld [vmem:[#allocation11 + $0x48] sm:$0xff] }
 0x148   :  { %v692_v6 = vld [vmem:[#allocation11 + $0x68] sm:$0xff] }
 0x149   :  { %3084 = vmatpush1.bf16.msra.mxu0 %v3083_v12  ;;  %v775_v12 = vld [vmem:[#allocation13 + $0x100] sm:$0xff] }
 0x14a   :  { %3090 = vmatprep.subr.bf16.mxu0 %v3089_v13  ;;  %v779_v13 = vld [vmem:[#allocation13 + $0x120] sm:$0xff] }
 0x14b   :  { %v3111_v15 = vpack.c.bf16 %v779_v13, %v775_v12  ;;  %v691_v12 = vld [vmem:[#allocation11 + $0x60] sm:$0xff] }
 0x14c   :  { %476 = vmatmul.mubr.f32.vlgmr.msra.gmra.mrb[2].mxu0 %v3940_v22  ;;  %v3095_v22 = vpack.c.bf16 %v747_v26, %v743_v25  ;;  %v783_v25 = vld [vmem:[#allocation13 + $0x140] sm:$0xff] }
 0x14d   :  { %3092 = vmatpush1.bf16.msra.mxu0 %v3091_v16  ;;  %621 = vmatprep.mubr.f32.mxu0 %v3658_v8  ;;  %v781_v16 = vld [vmem:[#allocation13 + $0x130] sm:$0xff]  ;;  %v787_v26 = vld [vmem:[#allocation13 + $0x160] sm:$0xff] }
 0x14e   :  { %3126 = vmatprep.subr.bf16.mxu0 %v3125_v23  ;;  %v3143_v17 = vpack.c.bf16 %v781_v16, %v777_v14  ;;  %v790_v23 = vld [vmem:[#allocation13 + $0x178] sm:$0xff]  ;;  %v3115_v28 = vpack.c.bf16 %v787_v26, %v783_v25  ;;  %v693_v16 = vld [vmem:[#allocation11 + $0x70] sm:$0xff]  ;;  %v695_v25 = vld [vmem:[#allocation11 + $0x80] sm:$0xff] }
 0x14f   :  { %v3145_v27 = vpack.c.bf16 %v790_v23, %v786_v20  ;;  %v698_v20 = vld [vmem:[#allocation11 + $0x98] sm:$0xff]  ;;  %v699_v26 = vld [vmem:[#allocation11 + $0xa0] sm:$0xff] }
 0x150   :  { %v702_v23 = vld [vmem:[#allocation11 + $0xb8] sm:$0xff] }
 0x1ff   :  { %v261_v41 = vpop.f32.mrb[0].mxu0 }
 0x200   :  { %v2846_v45 = vpop.f32.mrb[1].mxu0  ;;  %2712 = vmatmul.mubr.msk.f32.vlgmr.msra.gmra.mrb[0].mxu1 %vm482_vm2, %v261_v41  ;;  %2713 = vmatmul.mubr.msk.f32.vlgmr.msra.gmra.mrb[2].mxu0 %vm482_vm2, %v261_v41  ;;  %v797_v41 = vld [vmem:[#allocation13 + $0x1b0] sm:$0xff] }
 0x201   :  { %3096 = vmatpush1.bf16.msra.mxu1 %v3095_v22  ;;  %3128 = vmatpush1.bf16.msra.mxu0 %v3127_v33  ;;  %v796_v22 = vld [vmem:[#allocation13 + $0x1a8] sm:$0xff]  ;;  %v794_v33 = vld [vmem:[#allocation13 + $0x198] sm:$0xff]  ;;  %v3151_v42 = vpack.c.bf16 %v797_v41, %v793_v40  ;;  %v705_v40 = vld [vmem:[#allocation11 + $0xd0] sm:$0xff] }
 0x202   :  { %3098 = vmatprep.subr.bf16.mxu1 %v3097_v36  ;;  %3130 = vmatprep.subr.bf16.mxu0 %v3129_v37  ;;  %v3117_v34 = vpack.c.bf16 %v796_v22, %v792_v32  ;;  %v791_v36 = vld [vmem:[#allocation13 + $0x180] sm:$0xff]  ;;  %v3149_v38 = vpack.c.bf16 %v798_v35, %v794_v33  ;;  %v802_v45 = vld [vmem:[#allocation13 + $0x1d8] sm:$0xff]  ;;  %v704_v32 = vld [vmem:[#allocation11 + $0xc8] sm:$0xff] }
 0x203   :  { %876 = vmatprep.mubr.f32.mxu1 %v3658_v8  ;;  %947 = vmatprep.mubr.f32.mxu0 %v3658_v8  ;;  %v795_v37 = vld [vmem:[#allocation13 + $0x1a0] sm:$0xff]  ;;  %v708_v22 = vld [vmem:[#allocation11 + $0xe8] sm:$0xff]  ;;  %v706_v33 = vld [vmem:[#allocation11 + $0xd8] sm:$0xff] }
 0x204   :  { %v3119_v39 = vpack.c.bf16 %v795_v37, %v791_v36  ;;  %v710_v35 = vld [vmem:[#allocation11 + $0xf8] sm:$0xff]  ;;  %v703_v36 = vld [vmem:[#allocation11 + $0xc0] sm:$0xff]  ;;  %v709_v41 = vld [vmem:[#allocation11 + $0xf0] sm:$0xff] }
 0x205   :  { %3100 = vmatpush1.bf16.msra.mxu1 %v3099_v46  ;;  %3132 = vmatpush1.bf16.msra.mxu0 %v3131_v47  ;;  %v3121_v46 = vpack.c.bf16 %v804_v44, %v800_v43  ;;  %v806_v47 = vld [vmem:[#allocation13 + $0x1f8] sm:$0xff]  ;;  %v707_v37 = vld [vmem:[#allocation11 + $0xe0] sm:$0xff]  ;;  %v712_v43 = vld [vmem:[#allocation11 + $0x108] sm:$0xff] }
 0x206   :  { %3102 = vmatprep.subr.bf16.mxu1 %v3101_v50  ;;  %3134 = vmatprep.subr.bf16.mxu0 %v3133_v51  ;;  %v3153_v50 = vpack.c.bf16 %v806_v47, %v802_v45  ;;  %v3123_v51 = vpack.c.bf16 %v803_v49, %v799_v48  ;;  %v716_v44 = vld [vmem:[#allocation11 + $0x128] sm:$0xff]  ;;  %v718_v47 = vld [vmem:[#allocation11 + $0x138] sm:$0xff]  ;;  %v711_v48 = vld [vmem:[#allocation11 + $0x100] sm:$0xff] }
 0x207   :  { %v3173_v45 = vpack.c.bf16 %v716_v44, %v712_v43 }
 0x209   :  { %3104 = vmatpush1.bf16.msra.mxu1 %v3103_v58  ;;  %3136 = vmatpush1.bf16.msra.mxu0 %v3135_v59  ;;  %v3157_v58 = vpack.c.bf16 %v684_v56, %v680_v55  ;;  %v686_v59 = vld [vmem:[#allocation11 + $0x38] sm:$0xff]  ;;  %v720_v55 = vld [vmem:[#allocation11 + $0x148] sm:$0xff] }
 0x20a   :  { %3106 = vmatprep.subr.bf16.mxu1 %v3105_v62  ;;  %3138 = vmatprep.subr.bf16.mxu0 %v3137_v63  ;;  %v3189_v62 = vpack.c.bf16 %v686_v59, %v682_v57  ;;  %v3159_v63 = vpack.c.bf16 %v683_v61, %v679_v60  ;;  %v724_v56 = vld [vmem:[#allocation11 + $0x168] sm:$0xff]  ;;  %v722_v57 = vld [vmem:[#allocation11 + $0x158] sm:$0xff]  ;;  %v719_v60 = vld [vmem:[#allocation11 + $0x140] sm:$0xff] }
 0x20b   :  { %v726_v59 = vld [vmem:[#allocation11 + $0x178] sm:$0xff]  ;;  %v723_v61 = vld [vmem:[#allocation11 + $0x160] sm:$0xff] }
 0x20d   :  { %3108 = vmatpush1.bf16.msra.mxu1 %v3107_v7  ;;  %3140 = vmatpush1.bf16.msra.mxu0 %v3139_v9  ;;  %v690_v7 = vld [vmem:[#allocation11 + $0x58] sm:$0xff]  ;;  %v3161_v9 = vpack.c.bf16 %v692_v6, %v688_v5  ;;  %v732_v5 = vld [vmem:[#allocation11 + $0x1a8] sm:$0xff] }
 0x20e   :  { %3110 = vmatprep.subr.bf16.mxu1 %v3109_v10  ;;  %3142 = vmatprep.subr.bf16.mxu0 %v3141_v11  ;;  %v694_v10 = vld [vmem:[#allocation11 + $0x78] sm:$0xff]  ;;  %v687_v11 = vld [vmem:[#allocation11 + $0x40] sm:$0xff] }
 0x20f   :  { %v3193_v13 = vpack.c.bf16 %v694_v10, %v690_v7  ;;  %v3163_v14 = vpack.c.bf16 %v691_v12, %v687_v11  ;;  %v730_v6 = vld [vmem:[#allocation11 + $0x198] sm:$0xff]  ;;  %v727_v11 = vld [vmem:[#allocation11 + $0x180] sm:$0xff] }
 0x210   :  { %v734_v7 = vld [vmem:[#allocation11 + $0x1b8] sm:$0xff]  ;;  %v731_v12 = vld [vmem:[#allocation11 + $0x1a0] sm:$0xff] }
 0x211   :  { %3112 = vmatpush1.bf16.msra.mxu1 %v3111_v15  ;;  %3144 = vmatpush1.bf16.msra.mxu0 %v3143_v17  ;;  %v689_v15 = vld [vmem:[#allocation11 + $0x50] sm:$0xff]  ;;  %v3213_v10 = vpack.c.bf16 %v734_v7, %v730_v6 }
 0x212   :  { %3114 = vmatprep.subr.bf16.mxu1 %v3113_v21  ;;  %3146 = vmatprep.subr.bf16.mxu0 %v3145_v27  ;;  %v3195_v17 = vpack.c.bf16 %v693_v16, %v689_v15  ;;  %v3165_v21 = vpack.c.bf16 %v700_v19, %v696_v18  ;;  %v3197_v27 = vpack.c.bf16 %v702_v23, %v698_v20  ;;  %v733_v15 = vld [vmem:[#allocation11 + $0x1b0] sm:$0xff]  ;;  %v736_v16 = vld [vmem:[#allocation11 + $0x1c8] sm:$0xff]  ;;  %v738_v20 = vld [vmem:[#allocation11 + $0x1d8] sm:$0xff] }
 0x213   :  { %v735_v23 = vld [vmem:[#allocation11 + $0x1c0] sm:$0xff] }
 0x215   :  { %3116 = vmatpush1.bf16.msra.mxu1 %v3115_v28  ;;  %3148 = vmatpush1.bf16.msra.mxu0 %v3147_v31  ;;  %v3167_v28 = vpack.c.bf16 %v699_v26, %v695_v25  ;;  %v3199_v31 = vpack.c.bf16 %v701_v30, %v697_v29  ;;  %v739_v26 = vld [vmem:[#allocation11 + $0x1e0] sm:$0xff] }
 0x216   :  { %3118 = vmatprep.subr.bf16.mxu1 %v3117_v34  ;;  %3150 = vmatprep.subr.bf16.mxu0 %v3149_v38  ;;  %v3169_v34 = vpack.c.bf16 %v708_v22, %v704_v32  ;;  %v3201_v38 = vpack.c.bf16 %v710_v35, %v706_v33  ;;  %v3187_v29 = vpack.c.bf16 %v739_v26, %v735_v23  ;;  %v337_v22 = vld [vmem:[#allocation10] sm:$0xf] }
 0x219   :  { %3120 = vmatpush1.bf16.msra.mxu1 %v3119_v39  ;;  %3152 = vmatpush1.bf16.msra.mxu0 %v3151_v42  ;;  %v3171_v39 = vpack.c.bf16 %v707_v37, %v703_v36  ;;  %v3203_v42 = vpack.c.bf16 %v709_v41, %v705_v40 }
 0x21a   :  { %3122 = vmatprep.subr.bf16.mxu1 %v3121_v46  ;;  %3154 = vmatprep.subr.bf16.mxu0 %v3153_v50  ;;  %v714_v46 = vld [vmem:[#allocation11 + $0x118] sm:$0xff]  ;;  %v715_v50 = vld [vmem:[#allocation11 + $0x120] sm:$0xff] }
 0x21b   :  { %v3205_v49 = vpack.c.bf16 %v718_v47, %v714_v46  ;;  %v3175_v53 = vpack.c.bf16 %v715_v50, %v711_v48 }
 0x21d   :  { %3124 = vmatpush1.bf16.msra.mxu1 %v3123_v51  ;;  %3156 = vmatpush1.bf16.msra.mxu0 %v3155_v54  ;;  %v713_v51 = vld [vmem:[#allocation11 + $0x110] sm:$0xff] }
 0x21e   :  { %3158 = vmatprep.subr.bf16.mxu1 %v3157_v58  ;;  %3190 = vmatprep.subr.bf16.mxu0 %v3189_v62  ;;  %v3207_v54 = vpack.c.bf16 %v717_v52, %v713_v51  ;;  %v3177_v58 = vpack.c.bf16 %v724_v56, %v720_v55  ;;  %v3209_v62 = vpack.c.bf16 %v726_v59, %v722_v57  ;;  %v339_v56 = vld [vmem:[#allocation5] sm:$0xff] }
 0x220   :  { %877 = vmatmul.mubr.f32.vlgmr.msra.gmra.mrb[2].mxu1 %v809_v3  ;;  %948 = vmatmul.mubr.f32.vlgmr.msra.gmra.mrb[4].mxu0 %v809_v3  ;;  %v728_v3 = vld [vmem:[#allocation11 + $0x188] sm:$0xff] }
 0x221   :  { %3160 = vmatpush1.bf16.msra.mxu1 %v3159_v63  ;;  %3192 = vmatpush1.bf16.msra.mxu0 %v3191_v4  ;;  %v3179_v63 = vpack.c.bf16 %v723_v61, %v719_v60  ;;  %v3211_v4 = vpack.c.bf16 %v725_v2, %v721_v0 }
 0x222   :  { %1018 = vmatprep.mubr.f32.mxu1 %v3658_v8  ;;  %3162 = vmatprep.subr.bf16.mxu1 %v3161_v9  ;;  %v3181_v9 = vpack.c.bf16 %v732_v5, %v728_v3  ;;  %v1149_v3 = vld [vmem:[%s4208_s2] sm:$0xff] }
 0x223   :  { %1089 = vmatprep.mubr.f32.mxu0 %v3658_v8  ;;  %3194 = vmatprep.subr.bf16.mxu0 %v3193_v13  ;;  %v729_v13 = vld [vmem:[#allocation11 + $0x190] sm:$0xff] }
 0x224   :  { %v3215_v18 = vpack.c.bf16 %v733_v15, %v729_v13 }
 0x225   :  { %3164 = vmatpush1.bf16.msra.mxu1 %v3163_v14  ;;  %3196 = vmatpush1.bf16.msra.mxu0 %v3195_v17  ;;  %v3183_v14 = vpack.c.bf16 %v731_v12, %v727_v11  ;;  %v740_v17 = vld [vmem:[#allocation11 + $0x1e8] sm:$0xff] }
 0x226   :  { %3166 = vmatprep.subr.bf16.mxu1 %v3165_v21  ;;  %3198 = vmatprep.subr.bf16.mxu0 %v3197_v27  ;;  %v3185_v19 = vpack.c.bf16 %v740_v17, %v736_v16  ;;  %v742_v21 = vld [vmem:[#allocation11 + $0x1f8] sm:$0xff]  ;;  %v737_v27 = vld [vmem:[#allocation11 + $0x1d0] sm:$0xff] }
 0x227   :  { %v3217_v25 = vpack.c.bf16 %v742_v21, %v738_v20 }
 0x229   :  { %3168 = vmatpush1.bf16.msra.mxu1 %v3167_v28  ;;  %3200 = vmatpush1.bf16.msra.mxu0 %v3199_v31  ;;  %v741_v28 = vld [vmem:[#allocation11 + $0x1f0] sm:$0xff]  ;;  %v3957_v31 = vshrl.u32 %v171_v24, 7 }
 0x22a   :  { %3170 = vmatprep.subr.bf16.mxu1 %v3169_v34  ;;  %3202 = vmatprep.subr.bf16.mxu0 %v3201_v38  ;;  %v3219_v30 = vpack.c.bf16 %v741_v28, %v737_v27 }
 0x22b   :  { %v631_v32 = vsub.s32 0, %v3957_v31  ;;  %v635_v33 = vsub.s32 1, %v3957_v31  ;;  %v643_v38 = vsub.s32 3, %v3957_v31  ;;  %v639_v24 = vsub.s32 2, %v3957_v31 }
 0x22d   :  { %3172 = vmatpush1.bf16.msra.mxu1 %v3171_v39  ;;  %3204 = vmatpush1.bf16.msra.mxu0 %v3203_v42  ;;  %v632_v34 = vrot.slane %v337_v22, %v631_v32  ;;  %v636_v35 = vrot.slane %v337_v22, %v635_v33  ;;  %v640_v47 = vrot.slane %v337_v22, %v639_v24 }
 0x22e   :  { %3174 = vmatprep.subr.bf16.mxu1 %v3173_v45  ;;  %3206 = vmatprep.subr.bf16.mxu0 %v3205_v49  ;;  %v644_v45 = vrot.slane %v337_v22, %v643_v38 }
 0x231   :  { %3176 = vmatpush1.bf16.msra.mxu1 %v3175_v53  ;;  %3208 = vmatpush1.bf16.msra.mxu0 %v3207_v54 }
 0x232   :  { %3178 = vmatprep.subr.bf16.mxu1 %v3177_v58  ;;  %3210 = vmatprep.subr.bf16.mxu0 %v3209_v62 }
 0x235   :  { %3180 = vmatpush1.bf16.msra.mxu1 %v3179_v63  ;;  %3212 = vmatpush1.bf16.msra.mxu0 %v3211_v4  ;;  %v807_v4 = vld [vmem:[#allocation14] sm:$0xf] }
 0x236   :  { %3182 = vmatprep.subr.bf16.mxu1 %v3181_v9  ;;  %3214 = vmatprep.subr.bf16.mxu0 %v3213_v10  ;;  %v1100_v5 = vrot.slane %v807_v4, %v631_v32  ;;  %v1104_v6 = vrot.slane %v807_v4, %v635_v33  ;;  %v1112_v16 = vrot.slane %v807_v4, %v643_v38 }
 0x239   :  { %3184 = vmatpush1.bf16.msra.mxu1 %v3183_v14  ;;  %3216 = vmatpush1.bf16.msra.mxu0 %v3215_v18  ;;  %v1108_v18 = vrot.slane %v807_v4, %v639_v24 }
 0x23a   :  { %3186 = vmatprep.subr.bf16.mxu1 %v3185_v19  ;;  %3218 = vmatprep.subr.bf16.mxu0 %v3217_v25 }
 0x23d   :  { %3188 = vmatpush1.bf16.msra.mxu1 %v3187_v29  ;;  %3220 = vmatpush1.bf16.msra.mxu0 %v3219_v30  ;;  %v811_v29 = vld [vmem:[#allocation5 + $0x8] sm:$0xff] }
 0x23e   :  { %2847 = vmatprep.subr.mxu1 %v3658_v8  ;;  %2887 = vmatprep.subr.mxu0 %v3658_v8 }
 0x2d3   :  { %v552_v36 = vpop.f32.mrb[0].mxu1  ;;  %v623_v37 = vpop.f32.mrb[2].mxu0 }
 0x2d4   :  { %v649_v39 = vadd.f32 %v632_v34, %v552_v36  ;;  %v554_v40 = vpop.f32.mrb[1].mxu1  ;;  %v625_v41 = vpop.f32.mrb[3].mxu0  ;;  %v651_v49 = vadd.f32 %v640_v47, %v623_v37  ;;  %v3660_v36 = vmov 1966171168  }
 0x2d5   :  { %v650_v42 = vadd.f32 %v636_v35, %v554_v40  ;;  %v652_v46 = vadd.f32 %v644_v45, %v625_v41  ;;  %v1160_v37 = vunpack.c.l.s4 %v3660_v36  ;;  %v1150_v45 = vld [vmem:[%s4208_s2 + $0x8] sm:$0xff] }
 0x2d6   :  { %v2714_v43 = vmul.f32 -1.442695, %v649_v39 }
 0x2d7   :  { %v2715_v44 = vmul.f32 -1.442695, %v650_v42  ;;  %v2716_v48 = vmul.f32 -1.442695, %v652_v46  ;;  %v1161_v38 = vunpack.c.0.s8 %v1160_v37  ;;  %v3986_v46 = vld [vmem:[%s4208_s2 + $0x10] sm:$0xff] }
 0x2d8   :  { %3300 = vpow2.f32 %v2714_v43 }
 0x2d9   :  { %3302 = vpow2.f32 %v2715_v44  ;;  %v1164_v40 = vsub.s32 %v1161_v38, %v3957_v31 }
 0x2da   :  { %3304 = vpow2.f32 %v2716_v48  ;;  %v3995_v48 = vld [vmem:[%s4208_s2 + $0x18] sm:$0xff] }
 0x2db   :  { %3306 = vtanh.f32 %v651_v49 }
 0x2e2   :  { %v3301_v50 = vpop.eup %3300 }
 0x2e3   :  { %v3303_v51 = vpop.eup %3302  ;;  %v656_v52 = vadd.f32 1.0, %v3301_v50 }
 0x2e4   :  { %v662_v53 = vadd.f32 1.0, %v3303_v51  ;;  %v3305_v54 = vpop.eup %3304  ;;  %v4006_v51 = vld [vmem:[%s4208_s2 + $0x20] sm:$0xff] }
 0x2e5   :  { %3308 = vrcp.f32 %v656_v52  ;;  %v3307_v55 = vpop.eup %3306  ;;  %v669_v60 = vadd.f32 1.0, %v3305_v54  ;;  %v4015_v54 = vld [vmem:[%s4208_s2 + $0x28] sm:$0xff] }
 0x2e6   :  { %3310 = vrcp.f32 %v662_v53 }
 0x2e7   :  { %3312 = vrcp.f32 %v669_v60 }
 0x2ef   :  { %v3309_v57 = vpop.eup %3308 }
 0x2f0   :  { %v3311_v58 = vpop.eup %3310  ;;  %v673_v59 = vmul.f32 %v3309_v57, %v3307_v55  ;;  %v4024_v57 = vld [vmem:[%s4208_s2 + $0x30] sm:$0xff] }
 0x2f1   :  { %v672_v61 = vmul.f32 %v3311_v58, %v339_v56  ;;  %v3313_v63 = vpop.eup %3312 }
 0x2f3   :  { %v674_v62 = vadd.f32 %v673_v59, %v672_v61  ;;  %v4033_v59 = vld [vmem:[%s4208_s2 + $0x38] sm:$0xff] }
 0x2f5   :  { %678 = vst [vmem:[#allocation20] sm:$0xff] %v674_v62  ;;  %3314 = vtanh.f32 %v674_v62 }
 0x2ff   :  { %v3315_v0 = vpop.eup %3314 }
 0x300   :  { %v676_v2 = vmul.f32 %v3315_v0, %v3313_v63 }
 0x302   :  { %1019 = vmatmul.mubr.f32.vlgmr.msra.gmra.mrb[2].mxu1 %v676_v2  ;;  %677 = vst [vmem:[#allocation18] sm:$0xff] %v676_v2  ;;  %1090 = vmatmul.mubr.f32.vlgmr.msra.gmra.mrb[4].mxu0 %v676_v2 }
 0x303   :  { %2849 = vmatprep.mubr.msk.f32.mxu1 %vm3657_vm0, %v3658_v8  ;;  %2889 = vmatprep.mubr.msk.f32.mxu0 %vm3657_vm0, %v3658_v8 }
 0x304   :  { %2848 = vmatpush3.xpose.msra.mxu1 %v1149_v3  ;;  %2888 = vmatpush3.msra.mxu0 %v1149_v3 }
 0x305   :  { %2852 = vmatprep.subr.mxu1 %v3658_v8  ;;  %2897 = vmatprep.subr.mxu0 %v3658_v8 }
 0x3d5   :  { %v1020_v7 = vpop.f32.mrb[2].mxu1  ;;  %v1091_v9 = vpop.f32.mrb[4].mxu0 }
 0x3d6   :  { %v1117_v10 = vadd.f32 %v1100_v5, %v1020_v7  ;;  %v1022_v11 = vpop.f32.mrb[3].mxu1  ;;  %v1093_v12 = vpop.f32.mrb[5].mxu0  ;;  %v1119_v20 = vadd.f32 %v1108_v18, %v1091_v9 }
 0x3d7   :  { %v1118_v13 = vadd.f32 %v1104_v6, %v1022_v11  ;;  %v1120_v17 = vadd.f32 %v1112_v16, %v1093_v12 }
 0x3d8   :  { %v2717_v14 = vmul.f32 -1.442695, %v1117_v10 }
 0x3d9   :  { %v2718_v15 = vmul.f32 -1.442695, %v1118_v13  ;;  %v2719_v19 = vmul.f32 -1.442695, %v1120_v17 }
 0x3da   :  { %3316 = vpow2.f32 %v2717_v14 }
 0x3db   :  { %3318 = vpow2.f32 %v2718_v15 }
 0x3dc   :  { %3320 = vpow2.f32 %v2719_v19 }
 0x3dd   :  { %3322 = vtanh.f32 %v1119_v20 }
 0x3e4   :  { %v3317_v21 = vpop.eup %3316 }
 0x3e5   :  { %v3319_v23 = vpop.eup %3318  ;;  %v1124_v25 = vadd.f32 1.0, %v3317_v21 }
 0x3e6   :  { %v1130_v26 = vadd.f32 1.0, %v3319_v23  ;;  %v3321_v27 = vpop.eup %3320 }
 0x3e7   :  { %3324 = vrcp.f32 %v1124_v25  ;;  %v3323_v28 = vpop.eup %3322  ;;  %v1137_v33 = vadd.f32 1.0, %v3321_v27 }
 0x3e8   :  { %3326 = vrcp.f32 %v1130_v26 }
 0x3e9   :  { %3328 = vrcp.f32 %v1137_v33 }
 0x3f1   :  { %v3325_v30 = vpop.eup %3324 }
 0x3f2   :  { %v3327_v32 = vpop.eup %3326  ;;  %v1141_v22 = vmul.f32 %v3325_v30, %v3323_v28 }
 0x3f3   :  { %v1140_v34 = vmul.f32 %v3327_v32, %v811_v29  ;;  %v3329_v39 = vpop.eup %3328 }
 0x3f5   :  { %v1142_v35 = vadd.f32 %v1141_v22, %v1140_v34 }
 0x3f7   :  { %3330 = vtanh.f32 %v1142_v35  ;;  %1148 = vst [vmem:[#allocation20 + $0x8] sm:$0xff] %v1142_v35 }
 0x401   :  { %v3331_v41 = vpop.eup %3330 }
 0x402   :  { %v3973_v42 = vmul.f32 %v3331_v41, %v3329_v39 }
 0x404   :  { %1146 = vst [vmem:[#allocation18 + $0x8] sm:$0xff] %v3973_v42  ;;  %v1165_v43 = vrot.slane %v3973_v42, %v1164_v40  ;;  %v1158_v49 = vcombine.high %v3973_v42, %v3973_v42 }
 0x406   :  { %v1181_v44 = vrot.slane %v1165_v43, %v1164_v40  ;;  %v1173_v24 = vcombine.high %v1165_v43, %v1165_v43  ;;  %v1172_v52 = vrot.slane %v1158_v49, %v1164_v40 }
 0x408   :  { %2850 = vmatmul.mubr.f32.vlgmr.msra.gmra.mrb[4].mxu1 %v1181_v44  ;;  %v1195_v31 = vrot.slane %v1173_v24, %v1164_v40  ;;  %v1203_v47 = vcombine.high %v1181_v44, %v1181_v44  ;;  %v1188_v53 = vrot.slane %v1172_v52, %v1164_v40  ;;  %v1174_v55 = vcombine.high %v1172_v52, %v1172_v52 }
 0x409   :  { %2853 = vmatpush3.xpose.msra.mxu1 %v1150_v45  ;;  %2854 = vmatprep.mubr.msk.f32.mxu1 %vm3657_vm0, %v3658_v8 }
 0x40a   :  { %2857 = vmatprep.subr.mxu1 %v3658_v8  ;;  %v1205_v50 = vcombine.high %v1195_v31, %v1195_v31  ;;  %v1202_v56 = vrot.slane %v1174_v55, %v1164_v40  ;;  %v1204_v58 = vcombine.high %v1188_v53, %v1188_v53 }
 0x40c   :  { %2855 = vmatmul.mubr.f32.vlgmr.msra.gmra.mrb[6].mxu1 %v1195_v31  ;;  %v1206_v60 = vcombine.high %v1202_v56, %v1202_v56 }
 0x40d   :  { %2858 = vmatpush3.xpose.msra.mxu1 %v3986_v46  ;;  %2859 = vmatprep.mubr.msk.f32.mxu1 %vm3657_vm0, %v3658_v8 }
 0x40e   :  { %2862 = vmatprep.subr.mxu1 %v3658_v8 }
 0x410   :  { %2860 = vmatmul.mubr.f32.vlgmr.msra.gmra.mrb[8].mxu1 %v1203_v47 }
 0x411   :  { %2863 = vmatpush3.xpose.msra.mxu1 %v3995_v48  ;;  %2864 = vmatprep.mubr.msk.f32.mxu1 %vm3657_vm0, %v3658_v8 }
 0x412   :  { %2867 = vmatprep.subr.mxu1 %v3658_v8 }
 0x414   :  { %2865 = vmatmul.mubr.f32.vlgmr.msra.gmra.mrb[10].mxu1 %v1205_v50 }
 0x415   :  { %2868 = vmatpush3.xpose.msra.mxu1 %v4006_v51  ;;  %2869 = vmatprep.mubr.msk.f32.mxu1 %vm3657_vm0, %v3658_v8 }
 0x416   :  { %2872 = vmatprep.subr.mxu1 %v3658_v8 }
 0x418   :  { %2870 = vmatmul.mubr.f32.vlgmr.msra.gmra.mrb[12].mxu1 %v1188_v53 }
 0x419   :  { %2873 = vmatpush3.xpose.msra.mxu1 %v4015_v54  ;;  %2874 = vmatprep.mubr.msk.f32.mxu1 %vm3657_vm0, %v3658_v8 }
 0x41a   :  { %2877 = vmatprep.subr.mxu1 %v3658_v8 }
 0x41c   :  { %2875 = vmatmul.mubr.f32.vlgmr.msra.gmra.mrb[14].mxu1 %v1202_v56 }
 0x41d   :  { %2878 = vmatpush3.xpose.msra.mxu1 %v4024_v57  ;;  %2879 = vmatprep.mubr.msk.f32.mxu1 %vm3657_vm0, %v3658_v8 }
 0x41e   :  { %2882 = vmatprep.subr.mxu1 %v3658_v8 }
 0x420   :  { %2880 = vmatmul.mubr.f32.vlgmr.msra.gmra.mrb[16].mxu1 %v1204_v58 }
 0x421   :  { %2883 = vmatpush3.xpose.msra.mxu1 %v4033_v59  ;;  %2884 = vmatprep.mubr.msk.f32.mxu1 %vm3657_vm0, %v3658_v8 }
 0x422   :  { %2892 = vmatprep.subr.mxu1 %v3658_v8 }
 0x424   :  { %2885 = vmatmul.mubr.f32.vlgmr.msra.gmra.mrb[18].mxu1 %v1206_v60 }
 0x425   :  { %2893 = vmatpush3.msra.mxu1 %v1150_v45  ;;  %2894 = vmatprep.mubr.msk.f32.mxu1 %vm3657_vm0, %v3658_v8 }
 0x426   :  { %2902 = vmatprep.subr.mxu1 %v3658_v8 }
 0x4db   :  { %v1281_v61 = vpop.f32.mrb[4].mxu1 }
 0x4dc   :  { %v2851_v62 = vpop.f32.mrb[5].mxu1  ;;  %v1776_v63 = vsel %vm1775_vm3, %v1281_v61, -inf }
 0x4dd   :  { %1777 = vmax.xlane.f32.xlu0 %v1776_v63 }
 0x4df   :  { %v1351_v0 = vpop.f32.mrb[6].mxu1 }
 0x4e0   :  { %v2856_v2 = vpop.f32.mrb[7].mxu1  ;;  %v1779_v3 = vsel %vm1775_vm3, %v1351_v0, -inf }
 0x4e1   :  { %1780 = vmax.xlane.f32.xlu1 %v1779_v3 }
 0x4e3   :  { %v1421_v4 = vpop.f32.mrb[8].mxu1 }
 0x4e4   :  { %v2861_v5 = vpop.f32.mrb[9].mxu1  ;;  %v1782_v6 = vsel %vm1775_vm3, %v1421_v4, -inf }
 0x4e5   :  { %1783 = vmax.xlane.f32.xlu1 %v1782_v6 }
 0x4e7   :  { %v1491_v7 = vpop.f32.mrb[10].mxu1 }
 0x4e8   :  { %v2866_v9 = vpop.f32.mrb[11].mxu1  ;;  %v1785_v10 = vsel %vm1775_vm3, %v1491_v7, -inf }
 0x4e9   :  { %1786 = vmax.xlane.f32.xlu1 %v1785_v10 }
 0x4eb   :  { %v1561_v11 = vpop.f32.mrb[12].mxu1 }
 0x4ec   :  { %v2871_v12 = vpop.f32.mrb[13].mxu1  ;;  %v1788_v13 = vsel %vm1775_vm3, %v1561_v11, -inf }
 0x4ed   :  { %1789 = vmax.xlane.f32.xlu1 %v1788_v13 }
 0x4ef   :  { %v1631_v14 = vpop.f32.mrb[14].mxu1 }
 0x4f0   :  { %v2876_v15 = vpop.f32.mrb[15].mxu1  ;;  %v1791_v16 = vsel %vm1775_vm3, %v1631_v14, -inf }
 0x4f1   :  { %1792 = vmax.xlane.f32.xlu1 %v1791_v16 }
 0x4f3   :  { %v1701_v17 = vpop.f32.mrb[16].mxu1 }
 0x4f4   :  { %v2881_v18 = vpop.f32.mrb[17].mxu1  ;;  %v1794_v19 = vsel %vm1775_vm3, %v1701_v17, -inf }
 0x4f5   :  { %1795 = vmax.xlane.f32.xlu1 %v1794_v19 }
 0x4f7   :  { %v1771_v20 = vpop.f32.mrb[18].mxu1 }
 0x4f8   :  { %v2886_v21 = vpop.f32.mrb[19].mxu1  ;;  %v1797_v23 = vsel %vm1775_vm3, %v1771_v20, -inf }
 0x4f9   :  { %1798 = vmax.xlane.f32.xlu1 %v1797_v23 }
 0x56a   :  { %v1778_v25 = vpop.xlane.xlu0 %1777 }
 0x56b   :  { %v1800_v26 = vsub.f32 %v1281_v61, %v1778_v25 }
 0x56d   :  { %v1808_v27 = vmul.f32 1.442695, %v1800_v26 }
 0x56e   :  { %v1781_v28 = vpop.xlane.xlu1 %1780 }
 0x56f   :  { %3332 = vpow2.f32 %v1808_v27  ;;  %v1801_v29 = vsub.f32 %v1351_v0, %v1781_v28  ;;  %v2450_v28 = vld [vmem:[%s4217_s11 + $0x8] sm:$0xff] }
 0x571   :  { %v1810_v30 = vmul.f32 1.442695, %v1801_v29 }
 0x572   :  { %v1784_v32 = vpop.xlane.xlu1 %1783 }
 0x573   :  { %3334 = vpow2.f32 %v1810_v30  ;;  %v1802_v22 = vsub.f32 %v1421_v4, %v1784_v32  ;;  %v2451_v32 = vld [vmem:[%s4217_s11 + $0x10] sm:$0xff] }
 0x575   :  { %v1812_v33 = vmul.f32 1.442695, %v1802_v22  ;;  %v2452_v22 = vld [vmem:[%s4217_s11 + $0x18] sm:$0xff] }
 0x576   :  { %v1787_v34 = vpop.xlane.xlu1 %1786 }
 0x577   :  { %3336 = vpow2.f32 %v1812_v33  ;;  %v1803_v35 = vsub.f32 %v1491_v7, %v1787_v34  ;;  %v3249_v33 = vpack.c.bf16 %v2452_v22, %v2451_v32  ;;  %v2453_v34 = vld [vmem:[%s4217_s11 + $0x20] sm:$0xff] }
 0x579   :  { %v3333_v36 = vpop.eup %3332  ;;  %v1814_v37 = vmul.f32 1.442695, %v1803_v35  ;;  %v2454_v35 = vld [vmem:[%s4217_s11 + $0x28] sm:$0xff] }
 0x57a   :  { %v1790_v38 = vpop.xlane.xlu1 %1789  ;;  %v1824_v39 = vsel %vm1775_vm3, %v3333_v36, 0.0 }
 0x57b   :  { %3338 = vpow2.f32 %v1814_v37  ;;  %v1804_v40 = vsub.f32 %v1561_v11, %v1790_v38  ;;  %1825 = vadd.xlane.f32.xlu1 %v1824_v39  ;;  %v2455_v37 = vld [vmem:[%s4217_s11 + $0x30] sm:$0xff]  ;;  %v2457_v39 = vld [vmem:[%s4217_s11 + $0x40] sm:$0xff] }
 0x57d   :  { %v3335_v41 = vpop.eup %3334  ;;  %v1816_v43 = vmul.f32 1.442695, %v1804_v40  ;;  %v2458_v40 = vld [vmem:[%s4217_s11 + $0x48] sm:$0xff] }
 0x57e   :  { %v1793_v44 = vpop.xlane.xlu1 %1792  ;;  %v1827_v45 = vsel %vm1775_vm3, %v3335_v41, 0.0 }
 0x57f   :  { %3340 = vpow2.f32 %v1816_v43  ;;  %v1805_v24 = vsub.f32 %v1631_v14, %v1793_v44  ;;  %1828 = vadd.xlane.f32.xlu1 %v1827_v45  ;;  %v2459_v43 = vld [vmem:[%s4217_s11 + $0x50] sm:$0xff]  ;;  %v2460_v44 = vld [vmem:[%s4217_s11 + $0x58] sm:$0xff] }
 0x580   :  { %v3261_v45 = vpack.c.bf16 %v2460_v44, %v2459_v43 }
 0x581   :  { %v3337_v31 = vpop.eup %3336  ;;  %v1818_v47 = vmul.f32 1.442695, %v1805_v24  ;;  %v2461_v24 = vld [vmem:[%s4217_s11 + $0x60] sm:$0xff] }
 0x582   :  { %v1796_v49 = vpop.xlane.xlu1 %1795  ;;  %v1830_v50 = vsel %vm1775_vm3, %v3337_v31, 0.0 }
 0x583   :  { %3342 = vpow2.f32 %v1818_v47  ;;  %v1806_v52 = vsub.f32 %v1701_v17, %v1796_v49  ;;  %1831 = vadd.xlane.f32.xlu0 %v1830_v50  ;;  %v2463_v49 = vld [vmem:[%s4217_s11 + $0x70] sm:$0xff]  ;;  %v2464_v50 = vld [vmem:[%s4217_s11 + $0x78] sm:$0xff] }
 0x585   :  { %v3339_v53 = vpop.eup %3338  ;;  %v1820_v55 = vmul.f32 1.442695, %v1806_v52  ;;  %v3267_v52 = vpack.c.bf16 %v2464_v50, %v2463_v49 }
 0x586   :  { %v1799_v56 = vpop.xlane.xlu1 %1798  ;;  %v1833_v58 = vsel %vm1775_vm3, %v3339_v53, 0.0 }
 0x587   :  { %3344 = vpow2.f32 %v1820_v55  ;;  %v1807_v60 = vsub.f32 %v1771_v20, %v1799_v56  ;;  %1834 = vadd.xlane.f32.xlu1 %v1833_v58  ;;  %v2466_v55 = vld [vmem:[#allocation16 + $0x8] sm:$0xff]  ;;  %v2467_v58 = vld [vmem:[#allocation16 + $0x10] sm:$0xff] }
 0x589   :  { %v3341_v61 = vpop.eup %3340  ;;  %v1822_v62 = vmul.f32 1.442695, %v1807_v60  ;;  %v2468_v60 = vld [vmem:[#allocation16 + $0x18] sm:$0xff] }
 0x58a   :  { %v1836_v63 = vsel %vm1775_vm3, %v3341_v61, 0.0 }
 0x58b   :  { %3346 = vpow2.f32 %v1822_v62  ;;  %1837 = vadd.xlane.f32.xlu0 %v1836_v63  ;;  %v2469_v62 = vld [vmem:[#allocation16 + $0x20] sm:$0xff]  ;;  %v2470_v63 = vld [vmem:[#allocation16 + $0x28] sm:$0xff] }
 0x58d   :  { %v3343_v0 = vpop.eup %3342 }
 0x58e   :  { %v1839_v2 = vsel %vm1775_vm3, %v3343_v0, 0.0 }
 0x58f   :  { %1840 = vadd.xlane.f32.xlu1 %v1839_v2  ;;  %v2471_v2 = vld [vmem:[#allocation16 + $0x30] sm:$0xff] }
 0x591   :  { %v3345_v3 = vpop.eup %3344 }
 0x592   :  { %v1842_v4 = vsel %vm1775_vm3, %v3345_v3, 0.0 }
 0x593   :  { %1843 = vadd.xlane.f32.xlu0 %v1842_v4  ;;  %v2473_v4 = vld [vmem:[#allocation16 + $0x40] sm:$0xff] }
 0x595   :  { %v4057_v5 = vpop.eup %3346 }
 0x596   :  { %v1845_v6 = vsel %vm1775_vm3, %v4057_v5, 0.0 }
 0x597   :  { %1846 = vadd.xlane.f32.xlu1 %v1845_v6 }
 0x608   :  { %v1826_v7 = vpop.xlane.xlu1 %1825 }
 0x609   :  { %3348 = vrcp.f32 %v1826_v7  ;;  %v2475_v7 = vld [vmem:[#allocation16 + $0x50] sm:$0xff] }
 0x60c   :  { %v1829_v9 = vpop.xlane.xlu1 %1828 }
 0x60d   :  { %3350 = vrcp.f32 %v1829_v9  ;;  %v2476_v9 = vld [vmem:[#allocation16 + $0x58] sm:$0xff] }
 0x610   :  { %v1832_v10 = vpop.xlane.xlu0 %1831 }
 0x611   :  { %3352 = vrcp.f32 %v1832_v10  ;;  %v3237_v10 = vpack.c.bf16 %v2476_v9, %v2475_v7 }
 0x613   :  { %v3349_v11 = vpop.eup %3348 }
 0x614   :  { %v1849_v12 = vmul.f32 %v3349_v11, %v3333_v36  ;;  %v1835_v13 = vpop.xlane.xlu1 %1834  ;;  %v3252_v36 = vpack.c.bf16 %v2454_v35, %v2453_v34  ;;  %v2477_v11 = vld [vmem:[#allocation16 + $0x60] sm:$0xff] }
 0x615   :  { %3354 = vrcp.f32 %v1835_v13 }
 0x616   :  { %2890 = vmatmul.mubr.msk.f32.vlgmr.msra.gmra.mrb[6].mxu0 %vm1864_vm4, %v1849_v12  ;;  %v2478_v12 = vld [vmem:[#allocation16 + $0x68] sm:$0xff] }
 0x617   :  { %v3351_v14 = vpop.eup %3350  ;;  %2898 = vmatpush3.msra.mxu0 %v3986_v46  ;;  %2899 = vmatprep.mubr.msk.f32.mxu0 %vm3657_vm0, %v3658_v8  ;;  %v3240_v13 = vpack.c.bf16 %v2478_v12, %v2477_v11 }
 0x618   :  { %v1851_v15 = vmul.f32 %v3351_v14, %v3335_v41  ;;  %v1838_v16 = vpop.xlane.xlu0 %1837  ;;  %2907 = vmatprep.subr.mxu0 %v3658_v8  ;;  %v3258_v41 = vpack.c.bf16 %v2458_v40, %v2457_v39  ;;  %v2479_v14 = vld [vmem:[#allocation16 + $0x70] sm:$0xff] }
 0x619   :  { %3356 = vrcp.f32 %v1838_v16 }
 0x61a   :  { %2895 = vmatmul.mubr.msk.f32.vlgmr.msra.gmra.mrb[20].mxu1 %vm1864_vm4, %v1851_v15  ;;  %v2480_v15 = vld [vmem:[#allocation16 + $0x78] sm:$0xff] }
 0x61b   :  { %v3353_v17 = vpop.eup %3352  ;;  %2903 = vmatpush3.msra.mxu1 %v3995_v48  ;;  %2904 = vmatprep.mubr.msk.f32.mxu1 %vm3657_vm0, %v3658_v8  ;;  %v3243_v16 = vpack.c.bf16 %v2480_v15, %v2479_v14 }
 0x61c   :  { %v1853_v18 = vmul.f32 %v3353_v17, %v3337_v31  ;;  %v1841_v19 = vpop.xlane.xlu1 %1840  ;;  %2912 = vmatprep.subr.mxu1 %v3658_v8  ;;  %v2462_v31 = vld [vmem:[%s4217_s11 + $0x68] sm:$0xff] }
 0x61d   :  { %3358 = vrcp.f32 %v1841_v19  ;;  %v3264_v47 = vpack.c.bf16 %v2462_v31, %v2461_v24 }
 0x61e   :  { %2900 = vmatmul.mubr.msk.f32.vlgmr.msra.gmra.mrb[8].mxu0 %vm1864_vm4, %v1853_v18 }
 0x61f   :  { %v3355_v46 = vpop.eup %3354  ;;  %2908 = vmatpush3.msra.mxu0 %v4006_v51  ;;  %2909 = vmatprep.mubr.msk.f32.mxu0 %vm3657_vm0, %v3658_v8 }
 0x620   :  { %v1855_v20 = vmul.f32 %v3355_v46, %v3339_v53  ;;  %v1844_v21 = vpop.xlane.xlu0 %1843  ;;  %2917 = vmatprep.subr.mxu0 %v3658_v8  ;;  %v2465_v53 = vld [vmem:[#allocation16] sm:$0xff] }
 0x621   :  { %3360 = vrcp.f32 %v1844_v21  ;;  %v3222_v56 = vpack.c.bf16 %v2466_v55, %v2465_v53 }
 0x622   :  { %2905 = vmatmul.mubr.msk.f32.vlgmr.msra.gmra.mrb[22].mxu1 %vm1864_vm4, %v1855_v20 }
 0x623   :  { %v3357_v48 = vpop.eup %3356  ;;  %2913 = vmatpush3.msra.mxu1 %v4015_v54  ;;  %2914 = vmatprep.mubr.msk.f32.mxu1 %vm3657_vm0, %v3658_v8 }
 0x624   :  { %v1857_v23 = vmul.f32 %v3357_v48, %v3341_v61  ;;  %v1847_v25 = vpop.xlane.xlu1 %1846  ;;  %2922 = vmatprep.subr.mxu1 %v3658_v8  ;;  %v3225_v61 = vpack.c.bf16 %v2468_v60, %v2467_v58 }
 0x625   :  { %3362 = vrcp.f32 %v1847_v25 }
 0x626   :  { %2910 = vmatmul.mubr.msk.f32.vlgmr.msra.gmra.mrb[10].mxu0 %vm1864_vm4, %v1857_v23 }
 0x627   :  { %v3359_v51 = vpop.eup %3358  ;;  %2918 = vmatpush3.msra.mxu0 %v4024_v57  ;;  %2919 = vmatprep.mubr.msk.f32.mxu0 %vm3657_vm0, %v3658_v8  ;;  %v2449_v57 = vld [vmem:[%s4217_s11] sm:$0xff] }
 0x628   :  { %v1859_v26 = vmul.f32 %v3359_v51, %v3343_v0  ;;  %3221 = vmatprep.subr.bf16.mxu0 %v3656_v1  ;;  %v3246_v30 = vpack.c.bf16 %v2450_v28, %v2449_v57  ;;  %v3228_v0 = vpack.c.bf16 %v2470_v63, %v2469_v62 }
 0x62a   :  { %2915 = vmatmul.mubr.msk.f32.vlgmr.msra.gmra.mrb[24].mxu1 %vm1864_vm4, %v1859_v26 }
 0x62b   :  { %v3361_v54 = vpop.eup %3360  ;;  %2923 = vmatpush3.msra.mxu1 %v4033_v59  ;;  %2924 = vmatprep.mubr.msk.f32.mxu1 %vm3657_vm0, %v3658_v8 }
 0x62c   :  { %v1861_v27 = vmul.f32 %v3361_v54, %v3345_v3  ;;  %3245 = vmatprep.subr.bf16.mxu1 %v3656_v1 }
 0x62e   :  { %2920 = vmatmul.mubr.msk.f32.vlgmr.msra.gmra.mrb[12].mxu0 %vm1864_vm4, %v1861_v27 }
 0x62f   :  { %v3363_v29 = vpop.eup %3362  ;;  %2959 = vmatprep.mubr.msk.f32.mxu0 %vm3657_vm0, %v3658_v8  ;;  %3223 = vmatpush3.bf16.msra.mxu0 %v3222_v56 }
 0x630   :  { %v1863_v59 = vmul.f32 %v3363_v29, %v4057_v5  ;;  %3224 = vmatprep.subr.bf16.mxu0 %v3656_v1  ;;  %v2474_v5 = vld [vmem:[#allocation16 + $0x48] sm:$0xff] }
 0x631   :  { %v3234_v6 = vpack.c.bf16 %v2474_v5, %v2473_v4 }
 0x632   :  { %2925 = vmatmul.mubr.msk.f32.vlgmr.msra.gmra.mrb[26].mxu1 %vm1864_vm4, %v1863_v59 }
 0x633   :  { %3247 = vmatpush3.bf16.msra.mxu1 %v3246_v30  ;;  %2994 = vmatprep.mubr.msk.f32.mxu1 %vm3657_vm0, %v3658_v8  ;;  %v2456_v8 = vld [vmem:[%s4217_s11 + $0x38] sm:$0xff]  ;;  %s3661_s11 = smov [#allocation18]  }
 0x634   :  { %3248 = vmatprep.subr.bf16.mxu1 %v3656_v1  ;;  %v3255_v38 = vpack.c.bf16 %v2456_v8, %v2455_v37  ;;  %3226 = vmatpush3.bf16.msra.mxu0 %v3225_v61  ;;  %s2675_s7 = sshll.u32 %s3661_s11, 4  ;;  %s2676_s7 = int_to_ptr.vmem [resolvable:$true] %s2675_s7 }
 0x635   :  { %3227 = vmatprep.subr.bf16.mxu0 %v3656_v1  ;;  %s3562_s24 = scalar_lea.vmem %s2676_s7, 256  ;;  %p3567_p3 = scmp.lt.s32.totalorder %s2676_s7, %s2676_s7 }
 0x636   :  { %p3563_p2 = scmp.ne.s32.totalorder %s2676_s7, %s3562_s24  ;;  %p3568_p4 = scmp.lt.s32.totalorder %s3562_s24, %s3562_s24 }
 0x637   :  { %3250 = vmatpush3.bf16.msra.mxu1 %v3249_v33 }
 0x638   :  { %3251 = vmatprep.subr.bf16.mxu1 %v3656_v1  ;;  %3229 = vmatpush3.bf16.msra.mxu0 %v3228_v0  ;;  %p3569_p5 = por %p3568_p4, %p3567_p3 }
 0x639   :  { %3230 = vmatprep.subr.bf16.mxu0 %v3656_v1 }
 0x63a   :  { %p3570_p6 = pnand %p3569_p5, %p3563_p2 }
 0x63b   :  { %3253 = vmatpush3.bf16.msra.mxu1 %v3252_v36 }
 0x63c   :  { %3254 = vmatprep.subr.bf16.mxu1 %v3656_v1 }
 0x63f   :  { %3256 = vmatpush3.bf16.msra.mxu1 %v3255_v38 }
 0x640   :  { %3257 = vmatprep.subr.bf16.mxu1 %v3656_v1 }
 0x643   :  { %3259 = vmatpush3.bf16.msra.mxu1 %v3258_v41 }
 0x644   :  { %3260 = vmatprep.subr.bf16.mxu1 %v3656_v1 }
 0x647   :  { %3262 = vmatpush3.bf16.msra.mxu1 %v3261_v45 }
 0x648   :  { %3263 = vmatprep.subr.bf16.mxu1 %v3656_v1 }
 0x64b   :  { %3265 = vmatpush3.bf16.msra.mxu1 %v3264_v47 }
 0x64c   :  { %3266 = vmatprep.subr.bf16.mxu1 %v3656_v1 }
 0x64f   :  { %3268 = vmatpush3.bf16.msra.mxu1 %v3267_v52 }
 0x652   :  { %2995 = vmatmul.mubr.f32.vlgmr.msra.gmra.mrb[28].mxu1 %v3973_v42  ;;  %v2472_v42 = vld [vmem:[#allocation16 + $0x38] sm:$0xff] }
 0x653   :  { %v3231_v3 = vpack.c.bf16 %v2472_v42, %v2471_v2 }
 0x655   :  { %3232 = vmatpush3.bf16.msra.mxu0 %v3231_v3 }
 0x656   :  { %3233 = vmatprep.subr.bf16.mxu0 %v3656_v1 }
 0x659   :  { %3235 = vmatpush3.bf16.msra.mxu0 %v3234_v6 }
 0x65a   :  { %3236 = vmatprep.subr.bf16.mxu0 %v3656_v1 }
 0x65d   :  { %3238 = vmatpush3.bf16.msra.mxu0 %v3237_v10 }
 0x65e   :  { %3239 = vmatprep.subr.bf16.mxu0 %v3656_v1 }
 0x661   :  { %3241 = vmatpush3.bf16.msra.mxu0 %v3240_v13 }
 0x662   :  { %3242 = vmatprep.subr.bf16.mxu0 %v3656_v1 }
 0x665   :  { %3244 = vmatpush3.bf16.msra.mxu0 %v3243_v16 }
 0x6e9   :  { %v1934_v17 = vpop.f32.mrb[6].mxu0 }
 0x6ea   :  { %v2891_v18 = vpop.f32.mrb[7].mxu0 }
 0x6ed   :  { %v2007_v19 = vpop.f32.mrb[20].mxu1 }
 0x6ee   :  { %v2489_v46 = vrot.slane %v2007_v19, 7  ;;  %v2896_v20 = vpop.f32.mrb[21].mxu1 }
 0x6f0   :  { %v2491_v21 = vsel %vm2490_vm5, %v2489_v46, %v1934_v17 }
 0x6f1   :  { %v2080_v48 = vpop.f32.mrb[8].mxu0 }
 0x6f2   :  { %v2492_v23 = vrot.slane %v2080_v48, 6  ;;  %v2901_v25 = vpop.f32.mrb[9].mxu0 }
 0x6f4   :  { %v2494_v51 = vsel %vm2493_vm6, %v2492_v23, %v2491_v21 }
 0x6f5   :  { %v2153_v26 = vpop.f32.mrb[22].mxu1 }
 0x6f6   :  { %v2495_v54 = vrot.slane %v2153_v26, 5  ;;  %v2906_v1 = vpop.f32.mrb[23].mxu1 }
 0x6f8   :  { %v2497_v27 = vsel %vm2496_vm7, %v2495_v54, %v2494_v51 }
 0x6f9   :  { %v2226_v57 = vpop.f32.mrb[10].mxu0 }
 0x6fa   :  { %v2498_v28 = vrot.slane %v2226_v57, 4  ;;  %v2911_v29 = vpop.f32.mrb[11].mxu0 }
 0x6fc   :  { %v2500_v30 = vsel %vm2499_vm8, %v2498_v28, %v2497_v27 }
 0x6fd   :  { %v2299_v59 = vpop.f32.mrb[24].mxu1 }
 0x6fe   :  { %v2501_v32 = vrot.slane %v2299_v59, 3  ;;  %v2916_v22 = vpop.f32.mrb[25].mxu1 }
 0x700   :  { %v2503_v33 = vsel %vm2502_vm9, %v2501_v32, %v2500_v30 }
 0x701   :  { %v2372_v34 = vpop.f32.mrb[12].mxu0 }
 0x702   :  { %v2504_v35 = vrot.slane %v2372_v34, 2  ;;  %v2921_v36 = vpop.f32.mrb[13].mxu0 }
 0x704   :  { %v2506_v37 = vsel %vm2505_vm10, %v2504_v35, %v2503_v33 }
 0x705   :  { %v2445_v8 = vpop.f32.mrb[26].mxu1 }
 0x706   :  { %v2507_v38 = vrot.slane %v2445_v8, 1  ;;  %v2926_v39 = vpop.f32.mrb[27].mxu1 }
 0x708   :  { %v2509_v40 = vsel %vm2508_vm11, %v2507_v38, %v2506_v37 }
 0x709   :  { %2960 = vmatmul.mubr.f32.vlgmr.msra.gmra.mrb[14].mxu0 %v2509_v40 }
 0x725   :  { %v2647_v41 = vpop.f32.mrb[28].mxu1 }
 0x726   :  { %v2996_v43 = vpop.f32.mrb[29].mxu1 }
 0x727   :  { %3573 = shalt.err (!%p3570_p6)
}
 0x728   :  { %s3574_s6 = scalar_lea.hbm %s4221_s15, 256 }
 0x729   :  { %p3575_p7 = scmp.ne.s32.totalorder %s4221_s15, %s3574_s6  ;;  %p3578_p8 = scmp.lt.u32.totalorder %s3574_s6, %s4221_s15 }
 0x72b   :  { %p3580_p9 = pnand %p3578_p8, %p3575_p7 }
 0x72d   :  { %3583 = shalt.err (!%p3580_p9)
}
 0x72e   :  { %2681 = dma.vmem_to_hbm [thread:$0]  %s2676_s7, 256, %s4221_s15, [#allocation19], %s3643_s0, %s3643_s0, %s3644_s17  }
 0x72f   :  { %s3662_s3 = smov [#allocation20]  }
 0x730   :  { %s2687_s9 = sshll.u32 %s3662_s3, 4  ;;  %s2688_s9 = int_to_ptr.vmem [resolvable:$true] %s2687_s9 }
 0x731   :  { %s3584_s22 = scalar_lea.vmem %s2688_s9, 256  ;;  %p3589_p11 = scmp.lt.s32.totalorder %s2688_s9, %s2688_s9 }
 0x732   :  { %p3585_p10 = scmp.ne.s32.totalorder %s2688_s9, %s3584_s22  ;;  %p3590_p12 = scmp.lt.s32.totalorder %s3584_s22, %s3584_s22 }
 0x734   :  { %p3591_p13 = por %p3590_p12, %p3589_p11 }
 0x736   :  { %p3592_p0 = pnand %p3591_p13, %p3585_p10 }
 0x738   :  { %3595 = shalt.err (!%p3592_p0)
}
 0x739   :  { %s3596_s14 = scalar_lea.hbm %s4222_s16, 256 }
 0x73a   :  { %p3597_p1 = scmp.ne.s32.totalorder %s4222_s16, %s3596_s14  ;;  %p3600_p2 = scmp.lt.u32.totalorder %s3596_s14, %s4222_s16 }
 0x73c   :  { %p3602_p3 = pnand %p3600_p2, %p3597_p1 }
 0x73e   :  { %3605 = shalt.err (!%p3602_p3)
}
 0x73f   :  { %2693 = dma.vmem_to_hbm [thread:$0]  %s2688_s9, 256, %s4222_s16, [#allocation19], %s3643_s0, %s3643_s0, %s3644_s17  }
 0x740   :  { %v2728_v45 = vld [vmem:[%s4219_s13] ss:$0 sm:$0xff]  ;;  %s3663_s29 = smov [#allocation17]  }
 0x741   :  { %s2666_s11 = sshll.u32 %s3663_s29, 4  ;;  %s2667_s11 = int_to_ptr.vmem [resolvable:$true] %s2666_s11 }
 0x742   :  { %s3606_s7 = scalar_lea.vmem %s2667_s11, 128  ;;  %p3611_p5 = scmp.lt.s32.totalorder %s2667_s11, %s2667_s11 }
 0x743   :  { %p3607_p4 = scmp.ne.s32.totalorder %s2667_s11, %s3606_s7  ;;  %p3612_p6 = scmp.lt.s32.totalorder %s3606_s7, %s3606_s7 }
 0x745   :  { %p3613_p7 = por %p3612_p6, %p3611_p5 }
 0x747   :  { %p3614_p8 = pnand %p3613_p7, %p3607_p4 }
 0x7dc   :  { %v2577_v44 = vpop.f32.mrb[14].mxu0 }
 0x7dd   :  { %v2648_v24 = vadd.f32 %v2647_v41, %v2577_v44  ;;  %v2961_v31 = vpop.f32.mrb[15].mxu0 }
 0x7df   :  { %v2658_v47 = vadd.f32 %v2728_v45, %v2648_v24 }
 0x7e1   :  { %2659 = vst [vmem:[#allocation17] sm:$0xff] %v2658_v47 }
 0x7e2   :  { %3617 = shalt.err (!%p3614_p8)
}
 0x7e3   :  { %s4227_s17 = sld [smem:[#allocation29_spill]] }
 0x7e9   :  { %s3618_s24 = scalar_lea.hbm %s4227_s17, 128 }
 0x7ea   :  { %p3619_p9 = scmp.ne.s32.totalorder %s4227_s17, %s3618_s24  ;;  %p3622_p10 = scmp.lt.u32.totalorder %s3618_s24, %s4227_s17 }
 0x7ec   :  { %p3624_p11 = pnand %p3622_p10, %p3619_p9 }
 0x7ee   :  { %3627 = shalt.err (!%p3624_p11)
}
 0x7ef   :  { %2669 = dma.vmem_to_hbm [thread:$0]  %s2667_s11, 128, %s4227_s17, [#allocation4]  }
 0x7f0   :  { %3638 = dma.done.wait [#allocation4], 128  }
 0x7f1   :  { %3639 = vsyncadd [#allocation4], 4294967168 }
 0x7f2   :  { %3640 = dma.done.wait [#allocation19], 512  }
 0x7f3   :  { %3641 = vsyncadd [#allocation19], 4294966784 }
 0x7f4   :  { %2703 = vsyncpa [#allocation3], 1 }
 0x7f5   :  { %2704 = vsyncpa [#allocation6], 1 }
 0x7f6   :  { %2705 = vsyncpa [#allocation9], 1 }
 0x7f7   :  { %2706 = vsyncpa [#allocation12], 1 }
 0x7f8   :  { %2707 = vsyncpa [#allocation15], 1 }
 0x7f9   :  { %2708 = vsyncpa [#allocation4], 1 }
 0x7fa   :  { %2709 = vsyncpa [#allocation19], 1 }

</bundles_post_ra>
